<compile_context>
chip_gen: v5e
topology: v5e:2x2
jax: 0.10.0
libtpu: 0.0.40
codegen_flags: <defaults>
</compile_context>

<pallas_src>
import functools

import numpy as np
import jax
import jax.numpy as jnp
from jax import lax
from jax.experimental import pallas as pl
from jax.experimental.pallas import tpu as pltpu


def _round_up(x, m):
    return ((x + m - 1) // m) * m


def _loglik_chol_kernel(m0_ref, err_ref, out_ref, m_ref, *, n):
    """Bordered-Cholesky elimination of [[K_y, y], [y^T, 0]] in a VMEM scratch."""
    R, C = m_ref.shape
    f32 = jnp.float32

    # Small iota vectors; broadcasting inside jnp.where builds 2-D masks on demand.
    r = lax.broadcasted_iota(jnp.int32, (R, 1), 0)     # sublane index
    c = lax.broadcasted_iota(jnp.int32, (1, C), 1)     # lane index

    # K_y = K + ones(n,n) @ noise  ==  K + sum(err**2) in EVERY entry of the
    # n x n block (matches the PyTorch reference; NOT the diagonal-noise GP).
    noise_sum = jnp.sum(err_ref[...] * err_ref[...])
    in_kblock = (r < n) & (c < n)                      # one-time (R,C) mask
    m_ref[...] = m0_ref[...] + jnp.where(in_kblock, noise_sum, f32(0.0))

    diag = r == c                                      # hoisted: lane -> sublane pick

    def chol_step(j, logdet_acc):
        # Pivot row j (sublane-dynamic read); by symmetry it is also pivot column j.
        prow = m_ref[pl.ds(j, 1), :]                                 # (1, C)
        d = jnp.sum(jnp.where(c == j, prow, f32(0.0)))               # pivot value
        d = jnp.maximum(d, f32(1e-30))                               # fp32 round-off guard
        inv = lax.rsqrt(d)
        lrow = jnp.where(c > j, prow, f32(0.0)) * inv                # (1, C) trailing L row
        # lcol[i] = lrow[0, i]: pivot column rebuilt via the hoisted diagonal mask.
        lcol = jnp.sum(jnp.where(diag, lrow, f32(0.0)),
                       axis=1, keepdims=True)                        # (R, 1)
        # Rank-1 trailing update: pure VPU broadcast multiply (no MXU round-trip).
        # lrow/lcol are zero at indices <= j and in the padding, so the whole-matrix
        # subtract only touches the trailing block; eliminated rows/cols keep stale
        # values that are never read again.
        m_ref[...] = m_ref[...] - lcol * lrow
        return logdet_acc + jnp.log(d)                               # logdet in-loop

    logdet = lax.fori_loop(0, n, chol_step, jnp.zeros((1, 1), f32),
                           unroll=(n <= 64))[0, 0]

    # After eliminating the n K_y pivots, the bordered corner holds -y^T K_y^{-1} y.
    last = m_ref[pl.ds(n, 1), :]
    quad = -jnp.sum(jnp.where(c == n, last, f32(0.0)))

    const = float(n) / 2.0 * float(np.log(2.0 * np.pi))
    logp = -0.5 * quad - 0.5 * logdet - const
    out_ref[0, 0] = -(logp / n)


def log_likelihood(K, y, err):
    """Pallas wrapper: K (n,n), y (n,), err (n,) -> scalar -logp/n."""
    n = K.shape[0]
    m = n + 1                              # bordered size
    R = _round_up(m, 8)                    # sublane padding
    C = _round_up(m, 128)                  # lane padding
    f32 = jnp.float32

    # Bordered, padded matrix [[K, y], [y^T, 0]]; the noise term is added in-kernel.
    M0 = jnp.zeros((R, C), f32)
    M0 = M0.at[:n, :n].set(K.astype(f32))
    M0 = M0.at[:n, n].set(y.astype(f32))
    M0 = M0.at[n, :n].set(y.astype(f32))
    err_p = jnp.zeros((1, C), f32).at[0, :n].set(err.astype(f32))

    out = pl.pallas_call(
        functools.partial(_loglik_chol_kernel, n=n),
        out_shape=jax.ShapeDtypeStruct((1, 1), f32),
        in_specs=[pl.BlockSpec(memory_space=pltpu.MemorySpace.VMEM)] * 2,
        out_specs=pl.BlockSpec(memory_space=pltpu.MemorySpace.SMEM),
        scratch_shapes=[pltpu.VMEM((R, C), f32)],
        # NOTE: for n beyond ~2000 (v7x has only 64 MiB VMEM) this should switch
        # to a blocked panel Cholesky with MXU trailing updates and an explicit
        # pltpu.CompilerParams(vmem_limit_bytes=...) budget.
    )(M0, err_p)
    return out[0, 0]


def _reference(K, y, err):
    """Plain-JAX reference with identical semantics (float32)."""
    n = y.shape[0]
    noise = err.astype(jnp.float32) ** 2
    I = jnp.ones(K.shape, jnp.float32)
    K_y = K.astype(jnp.float32) + I @ noise            # broadcasts like torch
    sign, logdet = jnp.linalg.slogdet(K_y)
    quad = jnp.dot(jnp.linalg.solve(K_y, y.astype(jnp.float32)), y.astype(jnp.float32))
    logp = -0.5 * quad - 0.5 * logdet - n / 2.0 * np.log(2.0 * np.pi)
    return -(logp / n)


if __name__ == "__main__":
    n = 16
    key = jax.random.PRNGKey(0)
    kb, ky, ke = jax.random.split(key, 3)

    # deterministic, positive-definite covariance K
    B = jax.random.normal(kb, (n, n), dtype=jnp.float32)
    K = B @ B.T / n + 0.5 * jnp.eye(n, dtype=jnp.float32)
    y = jax.random.normal(ky, (n,), dtype=jnp.float32)
    err = 0.1 * jnp.abs(jax.random.normal(ke, (n,), dtype=jnp.float32)) + 0.05

    out = log_likelihood(K, y, err)
    out = jax.block_until_ready(out)

    ref = _reference(K, y, err)
    assert jnp.isfinite(out), "kernel produced non-finite output"
    assert jnp.allclose(out, ref, rtol=1e-2, atol=1e-2), (out, ref)

    print("KERNEL_OK")
</pallas_src>

<mosaic_0001>
module attributes {stable_mosaic.version = 11 : i64} {
  func.func @_loglik_chol_kernel(%arg0: memref<24x128xf32, #tpu.memory_space<vmem>>, %arg1: memref<1x128xf32, #tpu.memory_space<vmem>>, %arg2: memref<1x1xf32, #tpu.memory_space<smem>>, %arg3: memref<24x128xf32, #tpu.memory_space<vmem>>) attributes {dimension_semantics = [], scalar_prefetch = 0 : i64, scratch_operands = 1 : i64, tpu.core_type = #tpu.core_type<tc>} {
    %0 = tpu.iota {dimensions = array<i32: 0>} : vector<24x1xi32>
    %1 = tpu.iota {dimensions = array<i32: 1>} : vector<1x128xi32>
    %c0 = arith.constant 0 : index
    %c0_0 = arith.constant 0 : index
    %2 = vector.load %arg1[%c0, %c0_0] : memref<1x128xf32, #tpu.memory_space<vmem>>, vector<1x128xf32>
    %c0_1 = arith.constant 0 : index
    %c0_2 = arith.constant 0 : index
    %3 = vector.load %arg1[%c0_1, %c0_2] : memref<1x128xf32, #tpu.memory_space<vmem>>, vector<1x128xf32>
    %4 = arith.mulf %2, %3 : vector<1x128xf32>
    %5 = vector.shape_cast %4 : vector<1x128xf32> to vector<1x1x128xf32>
    %cst = arith.constant dense<0.000000e+00> : vector<1xf32>
    %6 = vector.multi_reduction <add>, %5, %cst [1, 2] : vector<1x1x128xf32> to vector<1xf32>
    %7 = vector.shape_cast %6 : vector<1xf32> to vector<1x1x1xf32>
    %8 = vector.extract %7[0, 0, 0] : f32 from vector<1x1x1xf32>
    %c16_i32 = arith.constant 16 : i32
    %9 = vector.broadcast %c16_i32 : i32 to vector<24x1xi32>
    %10 = arith.cmpi slt, %0, %9 : vector<24x1xi32>
    %c16_i32_3 = arith.constant 16 : i32
    %11 = vector.broadcast %c16_i32_3 : i32 to vector<1x128xi32>
    %12 = arith.cmpi slt, %1, %11 : vector<1x128xi32>
    %13 = vector.broadcast %10 : vector<24x1xi1> to vector<24x128xi1>
    %14 = vector.broadcast %12 : vector<1x128xi1> to vector<24x128xi1>
    %15 = arith.andi %13, %14 : vector<24x128xi1>
    %c0_4 = arith.constant 0 : index
    %c0_5 = arith.constant 0 : index
    %16 = vector.load %arg0[%c0_4, %c0_5] : memref<24x128xf32, #tpu.memory_space<vmem>>, vector<24x128xf32>
    %cst_6 = arith.constant 0.000000e+00 : f32
    %17 = vector.broadcast %8 : f32 to vector<24x128xf32>
    %18 = vector.broadcast %cst_6 : f32 to vector<24x128xf32>
    %19 = arith.select %15, %17, %18 : vector<24x128xi1>, vector<24x128xf32>
    %20 = arith.addf %16, %19 : vector<24x128xf32>
    %c0_7 = arith.constant 0 : index
    %c0_8 = arith.constant 0 : index
    %21 = vector.load %arg3[%c0_7, %c0_8] : memref<24x128xf32, #tpu.memory_space<vmem>>, vector<24x128xf32>
    tpu.vector_store %arg3[%c0_7, %c0_8], %20 {strides = array<i32>} : memref<24x128xf32, #tpu.memory_space<vmem>>, vector<24x128xf32>,
    %22 = vector.broadcast %0 : vector<24x1xi32> to vector<24x128xi32>
    %23 = vector.broadcast %1 : vector<1x128xi32> to vector<24x128xi32>
    %24 = arith.cmpi eq, %22, %23 : vector<24x128xi32>
    %cst_9 = arith.constant 0.000000e+00 : f32
    %25 = vector.broadcast %cst_9 : f32 to vector<1x1xf32>
    %c0_i32 = arith.constant 0 : i32
    %26 = arith.index_cast %c0_i32 : i32 to index
    %c0_10 = arith.constant 0 : index
    %27 = vector.load %arg3[%26, %c0_10] : memref<24x128xf32, #tpu.memory_space<vmem>>, vector<1x128xf32>
    %28 = vector.broadcast %c0_i32 : i32 to vector<1x128xi32>
    %29 = arith.cmpi eq, %1, %28 : vector<1x128xi32>
    %cst_11 = arith.constant 0.000000e+00 : f32
    %30 = vector.broadcast %cst_11 : f32 to vector<1x128xf32>
    %31 = arith.select %29, %27, %30 : vector<1x128xi1>, vector<1x128xf32>
    %32 = vector.shape_cast %31 : vector<1x128xf32> to vector<1x1x128xf32>
    %cst_12 = arith.constant dense<0.000000e+00> : vector<1xf32>
    %33 = vector.multi_reduction <add>, %32, %cst_12 [1, 2] : vector<1x1x128xf32> to vector<1xf32>
    %34 = vector.shape_cast %33 : vector<1xf32> to vector<1x1x1xf32>
    %35 = vector.extract %34[0, 0, 0] : f32 from vector<1x1x1xf32>
    %cst_13 = arith.constant 1.000000e-30 : f32
    %36 = arith.maximumf %35, %cst_13 : f32
    %37 = math.rsqrt %36 : f32
    %38 = vector.broadcast %c0_i32 : i32 to vector<1x128xi32>
    %39 = arith.cmpi sgt, %1, %38 : vector<1x128xi32>
    %cst_14 = arith.constant 0.000000e+00 : f32
    %40 = vector.broadcast %cst_14 : f32 to vector<1x128xf32>
    %41 = arith.select %39, %27, %40 : vector<1x128xi1>, vector<1x128xf32>
    %42 = vector.broadcast %37 : f32 to vector<1x128xf32>
    %43 = arith.mulf %41, %42 : vector<1x128xf32>
    %cst_15 = arith.constant 0.000000e+00 : f32
    %44 = vector.shape_cast %43 : vector<1x128xf32> to vector<1x128xf32>
    %45 = vector.broadcast %44 : vector<1x128xf32> to vector<24x128xf32>
    %46 = vector.broadcast %cst_15 : f32 to vector<24x128xf32>
    %47 = arith.select %24, %45, %46 : vector<24x128xi1>, vector<24x128xf32>
    %cst_16 = arith.constant dense<0.000000e+00> : vector<24xf32>
    %48 = vector.multi_reduction <add>, %47, %cst_16 [1] : vector<24x128xf32> to vector<24xf32>
    %49 = vector.shape_cast %48 : vector<24xf32> to vector<24x1xf32>
    %c0_17 = arith.constant 0 : index
    %c0_18 = arith.constant 0 : index
    %50 = vector.load %arg3[%c0_17, %c0_18] : memref<24x128xf32, #tpu.memory_space<vmem>>, vector<24x128xf32>
    %51 = vector.broadcast %49 : vector<24x1xf32> to vector<24x128xf32>
    %52 = vector.broadcast %43 : vector<1x128xf32> to vector<24x128xf32>
    %53 = arith.mulf %51, %52 : vector<24x128xf32>
    %54 = arith.subf %50, %53 : vector<24x128xf32>
    %c0_19 = arith.constant 0 : index
    %c0_20 = arith.constant 0 : index
    %55 = vector.load %arg3[%c0_19, %c0_20] : memref<24x128xf32, #tpu.memory_space<vmem>>, vector<24x128xf32>
    tpu.vector_store %arg3[%c0_19, %c0_20], %54 {strides = array<i32>} : memref<24x128xf32, #tpu.memory_space<vmem>>, vector<24x128xf32>,
    %56 = math.log %36 : f32
    %57 = vector.broadcast %56 : f32 to vector<1x1xf32>
    %58 = arith.addf %25, %57 : vector<1x1xf32>
    %c1_i32 = arith.constant 1 : i32
    %59 = arith.index_cast %c1_i32 : i32 to index
    %c0_21 = arith.constant 0 : index
    %60 = vector.load %arg3[%59, %c0_21] : memref<24x128xf32, #tpu.memory_space<vmem>>, vector<1x128xf32>
    %61 = vector.broadcast %c1_i32 : i32 to vector<1x128xi32>
    %62 = arith.cmpi eq, %1, %61 : vector<1x128xi32>
    %cst_22 = arith.constant 0.000000e+00 : f32
    %63 = vector.broadcast %cst_22 : f32 to vector<1x128xf32>
    %64 = arith.select %62, %60, %63 : vector<1x128xi1>, vector<1x128xf32>
    %65 = vector.shape_cast %64 : vector<1x128xf32> to vector<1x1x128xf32>
    %cst_23 = arith.constant dense<0.000000e+00> : vector<1xf32>
    %66 = vector.multi_reduction <add>, %65, %cst_23 [1, 2] : vector<1x1x128xf32> to vector<1xf32>
    %67 = vector.shape_cast %66 : vector<1xf32> to vector<1x1x1xf32>
    %68 = vector.extract %67[0, 0, 0] : f32 from vector<1x1x1xf32>
    %cst_24 = arith.constant 1.000000e-30 : f32
    %69 = arith.maximumf %68, %cst_24 : f32
    %70 = math.rsqrt %69 : f32
    %71 = vector.broadcast %c1_i32 : i32 to vector<1x128xi32>
    %72 = arith.cmpi sgt, %1, %71 : vector<1x128xi32>
    %cst_25 = arith.constant 0.000000e+00 : f32
    %73 = vector.broadcast %cst_25 : f32 to vector<1x128xf32>
    %74 = arith.select %72, %60, %73 : vector<1x128xi1>, vector<1x128xf32>
    %75 = vector.broadcast %70 : f32 to vector<1x128xf32>
    %76 = arith.mulf %74, %75 : vector<1x128xf32>
    %cst_26 = arith.constant 0.000000e+00 : f32
    %77 = vector.shape_cast %76 : vector<1x128xf32> to vector<1x128xf32>
    %78 = vector.broadcast %77 : vector<1x128xf32> to vector<24x128xf32>
    %79 = vector.broadcast %cst_26 : f32 to vector<24x128xf32>
    %80 = arith.select %24, %78, %79 : vector<24x128xi1>, vector<24x128xf32>
    %cst_27 = arith.constant dense<0.000000e+00> : vector<24xf32>
    %81 = vector.multi_reduction <add>, %80, %cst_27 [1] : vector<24x128xf32> to vector<24xf32>
    %82 = vector.shape_cast %81 : vector<24xf32> to vector<24x1xf32>
    %c0_28 = arith.constant 0 : index
    %c0_29 = arith.constant 0 : index
    %83 = vector.load %arg3[%c0_28, %c0_29] : memref<24x128xf32, #tpu.memory_space<vmem>>, vector<24x128xf32>
    %84 = vector.broadcast %82 : vector<24x1xf32> to vector<24x128xf32>
    %85 = vector.broadcast %76 : vector<1x128xf32> to vector<24x128xf32>
    %86 = arith.mulf %84, %85 : vector<24x128xf32>
    %87 = arith.subf %83, %86 : vector<24x128xf32>
    %c0_30 = arith.constant 0 : index
    %c0_31 = arith.constant 0 : index
    %88 = vector.load %arg3[%c0_30, %c0_31] : memref<24x128xf32, #tpu.memory_space<vmem>>, vector<24x128xf32>
    tpu.vector_store %arg3[%c0_30, %c0_31], %87 {strides = array<i32>} : memref<24x128xf32, #tpu.memory_space<vmem>>, vector<24x128xf32>,
    %89 = math.log %69 : f32
    %90 = vector.broadcast %89 : f32 to vector<1x1xf32>
    %91 = arith.addf %58, %90 : vector<1x1xf32>
    %c2_i32 = arith.constant 2 : i32
    %92 = arith.index_cast %c2_i32 : i32 to index
    %c0_32 = arith.constant 0 : index
    %93 = vector.load %arg3[%92, %c0_32] : memref<24x128xf32, #tpu.memory_space<vmem>>, vector<1x128xf32>
    %94 = vector.broadcast %c2_i32 : i32 to vector<1x128xi32>
    %95 = arith.cmpi eq, %1, %94 : vector<1x128xi32>
    %cst_33 = arith.constant 0.000000e+00 : f32
    %96 = vector.broadcast %cst_33 : f32 to vector<1x128xf32>
    %97 = arith.select %95, %93, %96 : vector<1x128xi1>, vector<1x128xf32>
    %98 = vector.shape_cast %97 : vector<1x128xf32> to vector<1x1x128xf32>
    %cst_34 = arith.constant dense<0.000000e+00> : vector<1xf32>
    %99 = vector.multi_reduction <add>, %98, %cst_34 [1, 2] : vector<1x1x128xf32> to vector<1xf32>
    %100 = vector.shape_cast %99 : vector<1xf32> to vector<1x1x1xf32>
    %101 = vector.extract %100[0, 0, 0] : f32 from vector<1x1x1xf32>
    %cst_35 = arith.constant 1.000000e-30 : f32
    %102 = arith.maximumf %101, %cst_35 : f32
    %103 = math.rsqrt %102 : f32
    %104 = vector.broadcast %c2_i32 : i32 to vector<1x128xi32>
    %105 = arith.cmpi sgt, %1, %104 : vector<1x128xi32>
    %cst_36 = arith.constant 0.000000e+00 : f32
    %106 = vector.broadcast %cst_36 : f32 to vector<1x128xf32>
    %107 = arith.select %105, %93, %106 : vector<1x128xi1>, vector<1x128xf32>
    %108 = vector.broadcast %103 : f32 to vector<1x128xf32>
    %109 = arith.mulf %107, %108 : vector<1x128xf32>
    %cst_37 = arith.constant 0.000000e+00 : f32
    %110 = vector.shape_cast %109 : vector<1x128xf32> to vector<1x128xf32>
    %111 = vector.broadcast %110 : vector<1x128xf32> to vector<24x128xf32>
    %112 = vector.broadcast %cst_37 : f32 to vector<24x128xf32>
    %113 = arith.select %24, %111, %112 : vector<24x128xi1>, vector<24x128xf32>
    %cst_38 = arith.constant dense<0.000000e+00> : vector<24xf32>
    %114 = vector.multi_reduction <add>, %113, %cst_38 [1] : vector<24x128xf32> to vector<24xf32>
    %115 = vector.shape_cast %114 : vector<24xf32> to vector<24x1xf32>
    %c0_39 = arith.constant 0 : index
    %c0_40 = arith.constant 0 : index
    %116 = vector.load %arg3[%c0_39, %c0_40] : memref<24x128xf32, #tpu.memory_space<vmem>>, vector<24x128xf32>
    %117 = vector.broadcast %115 : vector<24x1xf32> to vector<24x128xf32>
    %118 = vector.broadcast %109 : vector<1x128xf32> to vector<24x128xf32>
    %119 = arith.mulf %117, %118 : vector<24x128xf32>
    %120 = arith.subf %116, %119 : vector<24x128xf32>
    %c0_41 = arith.constant 0 : index
    %c0_42 = arith.constant 0 : index
    %121 = vector.load %arg3[%c0_41, %c0_42] : memref<24x128xf32, #tpu.memory_space<vmem>>, vector<24x128xf32>
    tpu.vector_store %arg3[%c0_41, %c0_42], %120 {strides = array<i32>} : memref<24x128xf32, #tpu.memory_space<vmem>>, vector<24x128xf32>,
    %122 = math.log %102 : f32
    %123 = vector.broadcast %122 : f32 to vector<1x1xf32>
    %124 = arith.addf %91, %123 : vector<1x1xf32>
    %c3_i32 = arith.constant 3 : i32
    %125 = arith.index_cast %c3_i32 : i32 to index
    %c0_43 = arith.constant 0 : index
    %126 = vector.load %arg3[%125, %c0_43] : memref<24x128xf32, #tpu.memory_space<vmem>>, vector<1x128xf32>
    %127 = vector.broadcast %c3_i32 : i32 to vector<1x128xi32>
    %128 = arith.cmpi eq, %1, %127 : vector<1x128xi32>
    %cst_44 = arith.constant 0.000000e+00 : f32
    %129 = vector.broadcast %cst_44 : f32 to vector<1x128xf32>
    %130 = arith.select %128, %126, %129 : vector<1x128xi1>, vector<1x128xf32>
    %131 = vector.shape_cast %130 : vector<1x128xf32> to vector<1x1x128xf32>
    %cst_45 = arith.constant dense<0.000000e+00> : vector<1xf32>
    %132 = vector.multi_reduction <add>, %131, %cst_45 [1, 2] : vector<1x1x128xf32> to vector<1xf32>
    %133 = vector.shape_cast %132 : vector<1xf32> to vector<1x1x1xf32>
    %134 = vector.extract %133[0, 0, 0] : f32 from vector<1x1x1xf32>
    %cst_46 = arith.constant 1.000000e-30 : f32
    %135 = arith.maximumf %134, %cst_46 : f32
    %136 = math.rsqrt %135 : f32
    %137 = vector.broadcast %c3_i32 : i32 to vector<1x128xi32>
    %138 = arith.cmpi sgt, %1, %137 : vector<1x128xi32>
    %cst_47 = arith.constant 0.000000e+00 : f32
    %139 = vector.broadcast %cst_47 : f32 to vector<1x128xf32>
    %140 = arith.select %138, %126, %139 : vector<1x128xi1>, vector<1x128xf32>
    %141 = vector.broadcast %136 : f32 to vector<1x128xf32>
    %142 = arith.mulf %140, %141 : vector<1x128xf32>
    %cst_48 = arith.constant 0.000000e+00 : f32
    %143 = vector.shape_cast %142 : vector<1x128xf32> to vector<1x128xf32>
    %144 = vector.broadcast %143 : vector<1x128xf32> to vector<24x128xf32>
    %145 = vector.broadcast %cst_48 : f32 to vector<24x128xf32>
    %146 = arith.select %24, %144, %145 : vector<24x128xi1>, vector<24x128xf32>
    %cst_49 = arith.constant dense<0.000000e+00> : vector<24xf32>
    %147 = vector.multi_reduction <add>, %146, %cst_49 [1] : vector<24x128xf32> to vector<24xf32>
    %148 = vector.shape_cast %147 : vector<24xf32> to vector<24x1xf32>
    %c0_50 = arith.constant 0 : index
    %c0_51 = arith.constant 0 : index
    %149 = vector.load %arg3[%c0_50, %c0_51] : memref<24x128xf32, #tpu.memory_space<vmem>>, vector<24x128xf32>
    %150 = vector.broadcast %148 : vector<24x1xf32> to vector<24x128xf32>
    %151 = vector.broadcast %142 : vector<1x128xf32> to vector<24x128xf32>
    %152 = arith.mulf %150, %151 : vector<24x128xf32>
    %153 = arith.subf %149, %152 : vector<24x128xf32>
    %c0_52 = arith.constant 0 : index
    %c0_53 = arith.constant 0 : index
    %154 = vector.load %arg3[%c0_52, %c0_53] : memref<24x128xf32, #tpu.memory_space<vmem>>, vector<24x128xf32>
    tpu.vector_store %arg3[%c0_52, %c0_53], %153 {strides = array<i32>} : memref<24x128xf32, #tpu.memory_space<vmem>>, vector<24x128xf32>,
    %155 = math.log %135 : f32
    %156 = vector.broadcast %155 : f32 to vector<1x1xf32>
    %157 = arith.addf %124, %156 : vector<1x1xf32>
    %c4_i32 = arith.constant 4 : i32
    %158 = arith.index_cast %c4_i32 : i32 to index
    %c0_54 = arith.constant 0 : index
    %159 = vector.load %arg3[%158, %c0_54] : memref<24x128xf32, #tpu.memory_space<vmem>>, vector<1x128xf32>
    %160 = vector.broadcast %c4_i32 : i32 to vector<1x128xi32>
    %161 = arith.cmpi eq, %1, %160 : vector<1x128xi32>
    %cst_55 = arith.constant 0.000000e+00 : f32
    %162 = vector.broadcast %cst_55 : f32 to vector<1x128xf32>
    %163 = arith.select %161, %159, %162 : vector<1x128xi1>, vector<1x128xf32>
    %164 = vector.shape_cast %163 : vector<1x128xf32> to vector<1x1x128xf32>
    %cst_56 = arith.constant dense<0.000000e+00> : vector<1xf32>
    %165 = vector.multi_reduction <add>, %164, %cst_56 [1, 2] : vector<1x1x128xf32> to vector<1xf32>
    %166 = vector.shape_cast %165 : vector<1xf32> to vector<1x1x1xf32>
    %167 = vector.extract %166[0, 0, 0] : f32 from vector<1x1x1xf32>
    %cst_57 = arith.constant 1.000000e-30 : f32
    %168 = arith.maximumf %167, %cst_57 : f32
    %169 = math.rsqrt %168 : f32
    %170 = vector.broadcast %c4_i32 : i32 to vector<1x128xi32>
    %171 = arith.cmpi sgt, %1, %170 : vector<1x128xi32>
    %cst_58 = arith.constant 0.000000e+00 : f32
    %172 = vector.broadcast %cst_58 : f32 to vector<1x128xf32>
    %173 = arith.select %171, %159, %172 : vector<1x128xi1>, vector<1x128xf32>
    %174 = vector.broadcast %169 : f32 to vector<1x128xf32>
    %175 = arith.mulf %173, %174 : vector<1x128xf32>
    %cst_59 = arith.constant 0.000000e+00 : f32
    %176 = vector.shape_cast %175 : vector<1x128xf32> to vector<1x128xf32>
    %177 = vector.broadcast %176 : vector<1x128xf32> to vector<24x128xf32>
    %178 = vector.broadcast %cst_59 : f32 to vector<24x128xf32>
    %179 = arith.select %24, %177, %178 : vector<24x128xi1>, vector<24x128xf32>
    %cst_60 = arith.constant dense<0.000000e+00> : vector<24xf32>
    %180 = vector.multi_reduction <add>, %179, %cst_60 [1] : vector<24x128xf32> to vector<24xf32>
    %181 = vector.shape_cast %180 : vector<24xf32> to vector<24x1xf32>
    %c0_61 = arith.constant 0 : index
    %c0_62 = arith.constant 0 : index
    %182 = vector.load %arg3[%c0_61, %c0_62] : memref<24x128xf32, #tpu.memory_space<vmem>>, vector<24x128xf32>
    %183 = vector.broadcast %181 : vector<24x1xf32> to vector<24x128xf32>
    %184 = vector.broadcast %175 : vector<1x128xf32> to vector<24x128xf32>
    %185 = arith.mulf %183, %184 : vector<24x128xf32>
    %186 = arith.subf %182, %185 : vector<24x128xf32>
    %c0_63 = arith.constant 0 : index
    %c0_64 = arith.constant 0 : index
    %187 = vector.load %arg3[%c0_63, %c0_64] : memref<24x128xf32, #tpu.memory_space<vmem>>, vector<24x128xf32>
    tpu.vector_store %arg3[%c0_63, %c0_64], %186 {strides = array<i32>} : memref<24x128xf32, #tpu.memory_space<vmem>>, vector<24x128xf32>,
    %188 = math.log %168 : f32
    %189 = vector.broadcast %188 : f32 to vector<1x1xf32>
    %190 = arith.addf %157, %189 : vector<1x1xf32>
    %c5_i32 = arith.constant 5 : i32
    %191 = arith.index_cast %c5_i32 : i32 to index
    %c0_65 = arith.constant 0 : index
    %192 = vector.load %arg3[%191, %c0_65] : memref<24x128xf32, #tpu.memory_space<vmem>>, vector<1x128xf32>
    %193 = vector.broadcast %c5_i32 : i32 to vector<1x128xi32>
    %194 = arith.cmpi eq, %1, %193 : vector<1x128xi32>
    %cst_66 = arith.constant 0.000000e+00 : f32
    %195 = vector.broadcast %cst_66 : f32 to vector<1x128xf32>
    %196 = arith.select %194, %192, %195 : vector<1x128xi1>, vector<1x128xf32>
    %197 = vector.shape_cast %196 : vector<1x128xf32> to vector<1x1x128xf32>
    %cst_67 = arith.constant dense<0.000000e+00> : vector<1xf32>
    %198 = vector.multi_reduction <add>, %197, %cst_67 [1, 2] : vector<1x1x128xf32> to vector<1xf32>
    %199 = vector.shape_cast %198 : vector<1xf32> to vector<1x1x1xf32>
    %200 = vector.extract %199[0, 0, 0] : f32 from vector<1x1x1xf32>
    %cst_68 = arith.constant 1.000000e-30 : f32
    %201 = arith.maximumf %200, %cst_68 : f32
    %202 = math.rsqrt %201 : f32
    %203 = vector.broadcast %c5_i32 : i32 to vector<1x128xi32>
    %204 = arith.cmpi sgt, %1, %203 : vector<1x128xi32>
    %cst_69 = arith.constant 0.000000e+00 : f32
    %205 = vector.broadcast %cst_69 : f32 to vector<1x128xf32>
    %206 = arith.select %204, %192, %205 : vector<1x128xi1>, vector<1x128xf32>
    %207 = vector.broadcast %202 : f32 to vector<1x128xf32>
    %208 = arith.mulf %206, %207 : vector<1x128xf32>
    %cst_70 = arith.constant 0.000000e+00 : f32
    %209 = vector.shape_cast %208 : vector<1x128xf32> to vector<1x128xf32>
    %210 = vector.broadcast %209 : vector<1x128xf32> to vector<24x128xf32>
    %211 = vector.broadcast %cst_70 : f32 to vector<24x128xf32>
    %212 = arith.select %24, %210, %211 : vector<24x128xi1>, vector<24x128xf32>
    %cst_71 = arith.constant dense<0.000000e+00> : vector<24xf32>
    %213 = vector.multi_reduction <add>, %212, %cst_71 [1] : vector<24x128xf32> to vector<24xf32>
    %214 = vector.shape_cast %213 : vector<24xf32> to vector<24x1xf32>
    %c0_72 = arith.constant 0 : index
    %c0_73 = arith.constant 0 : index
    %215 = vector.load %arg3[%c0_72, %c0_73] : memref<24x128xf32, #tpu.memory_space<vmem>>, vector<24x128xf32>
    %216 = vector.broadcast %214 : vector<24x1xf32> to vector<24x128xf32>
    %217 = vector.broadcast %208 : vector<1x128xf32> to vector<24x128xf32>
    %218 = arith.mulf %216, %217 : vector<24x128xf32>
    %219 = arith.subf %215, %218 : vector<24x128xf32>
    %c0_74 = arith.constant 0 : index
    %c0_75 = arith.constant 0 : index
    %220 = vector.load %arg3[%c0_74, %c0_75] : memref<24x128xf32, #tpu.memory_space<vmem>>, vector<24x128xf32>
    tpu.vector_store %arg3[%c0_74, %c0_75], %219 {strides = array<i32>} : memref<24x128xf32, #tpu.memory_space<vmem>>, vector<24x128xf32>,
    %221 = math.log %201 : f32
    %222 = vector.broadcast %221 : f32 to vector<1x1xf32>
    %223 = arith.addf %190, %222 : vector<1x1xf32>
    %c6_i32 = arith.constant 6 : i32
    %224 = arith.index_cast %c6_i32 : i32 to index
    %c0_76 = arith.constant 0 : index
    %225 = vector.load %arg3[%224, %c0_76] : memref<24x128xf32, #tpu.memory_space<vmem>>, vector<1x128xf32>
    %226 = vector.broadcast %c6_i32 : i32 to vector<1x128xi32>
    %227 = arith.cmpi eq, %1, %226 : vector<1x128xi32>
    %cst_77 = arith.constant 0.000000e+00 : f32
    %228 = vector.broadcast %cst_77 : f32 to vector<1x128xf32>
    %229 = arith.select %227, %225, %228 : vector<1x128xi1>, vector<1x128xf32>
    %230 = vector.shape_cast %229 : vector<1x128xf32> to vector<1x1x128xf32>
    %cst_78 = arith.constant dense<0.000000e+00> : vector<1xf32>
    %231 = vector.multi_reduction <add>, %230, %cst_78 [1, 2] : vector<1x1x128xf32> to vector<1xf32>
    %232 = vector.shape_cast %231 : vector<1xf32> to vector<1x1x1xf32>
    %233 = vector.extract %232[0, 0, 0] : f32 from vector<1x1x1xf32>
    %cst_79 = arith.constant 1.000000e-30 : f32
    %234 = arith.maximumf %233, %cst_79 : f32
    %235 = math.rsqrt %234 : f32
    %236 = vector.broadcast %c6_i32 : i32 to vector<1x128xi32>
    %237 = arith.cmpi sgt, %1, %236 : vector<1x128xi32>
    %cst_80 = arith.constant 0.000000e+00 : f32
    %238 = vector.broadcast %cst_80 : f32 to vector<1x128xf32>
    %239 = arith.select %237, %225, %238 : vector<1x128xi1>, vector<1x128xf32>
    %240 = vector.broadcast %235 : f32 to vector<1x128xf32>
    %241 = arith.mulf %239, %240 : vector<1x128xf32>
    %cst_81 = arith.constant 0.000000e+00 : f32
    %242 = vector.shape_cast %241 : vector<1x128xf32> to vector<1x128xf32>
    %243 = vector.broadcast %242 : vector<1x128xf32> to vector<24x128xf32>
    %244 = vector.broadcast %cst_81 : f32 to vector<24x128xf32>
    %245 = arith.select %24, %243, %244 : vector<24x128xi1>, vector<24x128xf32>
    %cst_82 = arith.constant dense<0.000000e+00> : vector<24xf32>
    %246 = vector.multi_reduction <add>, %245, %cst_82 [1] : vector<24x128xf32> to vector<24xf32>
    %247 = vector.shape_cast %246 : vector<24xf32> to vector<24x1xf32>
    %c0_83 = arith.constant 0 : index
    %c0_84 = arith.constant 0 : index
    %248 = vector.load %arg3[%c0_83, %c0_84] : memref<24x128xf32, #tpu.memory_space<vmem>>, vector<24x128xf32>
    %249 = vector.broadcast %247 : vector<24x1xf32> to vector<24x128xf32>
    %250 = vector.broadcast %241 : vector<1x128xf32> to vector<24x128xf32>
    %251 = arith.mulf %249, %250 : vector<24x128xf32>
    %252 = arith.subf %248, %251 : vector<24x128xf32>
    %c0_85 = arith.constant 0 : index
    %c0_86 = arith.constant 0 : index
    %253 = vector.load %arg3[%c0_85, %c0_86] : memref<24x128xf32, #tpu.memory_space<vmem>>, vector<24x128xf32>
    tpu.vector_store %arg3[%c0_85, %c0_86], %252 {strides = array<i32>} : memref<24x128xf32, #tpu.memory_space<vmem>>, vector<24x128xf32>,
    %254 = math.log %234 : f32
    %255 = vector.broadcast %254 : f32 to vector<1x1xf32>
    %256 = arith.addf %223, %255 : vector<1x1xf32>
    %c7_i32 = arith.constant 7 : i32
    %257 = arith.index_cast %c7_i32 : i32 to index
    %c0_87 = arith.constant 0 : index
    %258 = vector.load %arg3[%257, %c0_87] : memref<24x128xf32, #tpu.memory_space<vmem>>, vector<1x128xf32>
    %259 = vector.broadcast %c7_i32 : i32 to vector<1x128xi32>
    %260 = arith.cmpi eq, %1, %259 : vector<1x128xi32>
    %cst_88 = arith.constant 0.000000e+00 : f32
    %261 = vector.broadcast %cst_88 : f32 to vector<1x128xf32>
    %262 = arith.select %260, %258, %261 : vector<1x128xi1>, vector<1x128xf32>
    %263 = vector.shape_cast %262 : vector<1x128xf32> to vector<1x1x128xf32>
    %cst_89 = arith.constant dense<0.000000e+00> : vector<1xf32>
    %264 = vector.multi_reduction <add>, %263, %cst_89 [1, 2] : vector<1x1x128xf32> to vector<1xf32>
    %265 = vector.shape_cast %264 : vector<1xf32> to vector<1x1x1xf32>
    %266 = vector.extract %265[0, 0, 0] : f32 from vector<1x1x1xf32>
    %cst_90 = arith.constant 1.000000e-30 : f32
    %267 = arith.maximumf %266, %cst_90 : f32
    %268 = math.rsqrt %267 : f32
    %269 = vector.broadcast %c7_i32 : i32 to vector<1x128xi32>
    %270 = arith.cmpi sgt, %1, %269 : vector<1x128xi32>
    %cst_91 = arith.constant 0.000000e+00 : f32
    %271 = vector.broadcast %cst_91 : f32 to vector<1x128xf32>
    %272 = arith.select %270, %258, %271 : vector<1x128xi1>, vector<1x128xf32>
    %273 = vector.broadcast %268 : f32 to vector<1x128xf32>
    %274 = arith.mulf %272, %273 : vector<1x128xf32>
    %cst_92 = arith.constant 0.000000e+00 : f32
    %275 = vector.shape_cast %274 : vector<1x128xf32> to vector<1x128xf32>
    %276 = vector.broadcast %275 : vector<1x128xf32> to vector<24x128xf32>
    %277 = vector.broadcast %cst_92 : f32 to vector<24x128xf32>
    %278 = arith.select %24, %276, %277 : vector<24x128xi1>, vector<24x128xf32>
    %cst_93 = arith.constant dense<0.000000e+00> : vector<24xf32>
    %279 = vector.multi_reduction <add>, %278, %cst_93 [1] : vector<24x128xf32> to vector<24xf32>
    %280 = vector.shape_cast %279 : vector<24xf32> to vector<24x1xf32>
    %c0_94 = arith.constant 0 : index
    %c0_95 = arith.constant 0 : index
    %281 = vector.load %arg3[%c0_94, %c0_95] : memref<24x128xf32, #tpu.memory_space<vmem>>, vector<24x128xf32>
    %282 = vector.broadcast %280 : vector<24x1xf32> to vector<24x128xf32>
    %283 = vector.broadcast %274 : vector<1x128xf32> to vector<24x128xf32>
    %284 = arith.mulf %282, %283 : vector<24x128xf32>
    %285 = arith.subf %281, %284 : vector<24x128xf32>
    %c0_96 = arith.constant 0 : index
    %c0_97 = arith.constant 0 : index
    %286 = vector.load %arg3[%c0_96, %c0_97] : memref<24x128xf32, #tpu.memory_space<vmem>>, vector<24x128xf32>
    tpu.vector_store %arg3[%c0_96, %c0_97], %285 {strides = array<i32>} : memref<24x128xf32, #tpu.memory_space<vmem>>, vector<24x128xf32>,
    %287 = math.log %267 : f32
    %288 = vector.broadcast %287 : f32 to vector<1x1xf32>
    %289 = arith.addf %256, %288 : vector<1x1xf32>
    %c8_i32 = arith.constant 8 : i32
    %290 = arith.index_cast %c8_i32 : i32 to index
    %c0_98 = arith.constant 0 : index
    %291 = vector.load %arg3[%290, %c0_98] : memref<24x128xf32, #tpu.memory_space<vmem>>, vector<1x128xf32>
    %292 = vector.broadcast %c8_i32 : i32 to vector<1x128xi32>
    %293 = arith.cmpi eq, %1, %292 : vector<1x128xi32>
    %cst_99 = arith.constant 0.000000e+00 : f32
    %294 = vector.broadcast %cst_99 : f32 to vector<1x128xf32>
    %295 = arith.select %293, %291, %294 : vector<1x128xi1>, vector<1x128xf32>
    %296 = vector.shape_cast %295 : vector<1x128xf32> to vector<1x1x128xf32>
    %cst_100 = arith.constant dense<0.000000e+00> : vector<1xf32>
    %297 = vector.multi_reduction <add>, %296, %cst_100 [1, 2] : vector<1x1x128xf32> to vector<1xf32>
    %298 = vector.shape_cast %297 : vector<1xf32> to vector<1x1x1xf32>
    %299 = vector.extract %298[0, 0, 0] : f32 from vector<1x1x1xf32>
    %cst_101 = arith.constant 1.000000e-30 : f32
    %300 = arith.maximumf %299, %cst_101 : f32
    %301 = math.rsqrt %300 : f32
    %302 = vector.broadcast %c8_i32 : i32 to vector<1x128xi32>
    %303 = arith.cmpi sgt, %1, %302 : vector<1x128xi32>
    %cst_102 = arith.constant 0.000000e+00 : f32
    %304 = vector.broadcast %cst_102 : f32 to vector<1x128xf32>
    %305 = arith.select %303, %291, %304 : vector<1x128xi1>, vector<1x128xf32>
    %306 = vector.broadcast %301 : f32 to vector<1x128xf32>
    %307 = arith.mulf %305, %306 : vector<1x128xf32>
    %cst_103 = arith.constant 0.000000e+00 : f32
    %308 = vector.shape_cast %307 : vector<1x128xf32> to vector<1x128xf32>
    %309 = vector.broadcast %308 : vector<1x128xf32> to vector<24x128xf32>
    %310 = vector.broadcast %cst_103 : f32 to vector<24x128xf32>
    %311 = arith.select %24, %309, %310 : vector<24x128xi1>, vector<24x128xf32>
    %cst_104 = arith.constant dense<0.000000e+00> : vector<24xf32>
    %312 = vector.multi_reduction <add>, %311, %cst_104 [1] : vector<24x128xf32> to vector<24xf32>
    %313 = vector.shape_cast %312 : vector<24xf32> to vector<24x1xf32>
    %c0_105 = arith.constant 0 : index
    %c0_106 = arith.constant 0 : index
    %314 = vector.load %arg3[%c0_105, %c0_106] : memref<24x128xf32, #tpu.memory_space<vmem>>, vector<24x128xf32>
    %315 = vector.broadcast %313 : vector<24x1xf32> to vector<24x128xf32>
    %316 = vector.broadcast %307 : vector<1x128xf32> to vector<24x128xf32>
    %317 = arith.mulf %315, %316 : vector<24x128xf32>
    %318 = arith.subf %314, %317 : vector<24x128xf32>
    %c0_107 = arith.constant 0 : index
    %c0_108 = arith.constant 0 : index
    %319 = vector.load %arg3[%c0_107, %c0_108] : memref<24x128xf32, #tpu.memory_space<vmem>>, vector<24x128xf32>
    tpu.vector_store %arg3[%c0_107, %c0_108], %318 {strides = array<i32>} : memref<24x128xf32, #tpu.memory_space<vmem>>, vector<24x128xf32>,
    %320 = math.log %300 : f32
    %321 = vector.broadcast %320 : f32 to vector<1x1xf32>
    %322 = arith.addf %289, %321 : vector<1x1xf32>
    %c9_i32 = arith.constant 9 : i32
    %323 = arith.index_cast %c9_i32 : i32 to index
    %c0_109 = arith.constant 0 : index
    %324 = vector.load %arg3[%323, %c0_109] : memref<24x128xf32, #tpu.memory_space<vmem>>, vector<1x128xf32>
    %325 = vector.broadcast %c9_i32 : i32 to vector<1x128xi32>
    %326 = arith.cmpi eq, %1, %325 : vector<1x128xi32>
    %cst_110 = arith.constant 0.000000e+00 : f32
    %327 = vector.broadcast %cst_110 : f32 to vector<1x128xf32>
    %328 = arith.select %326, %324, %327 : vector<1x128xi1>, vector<1x128xf32>
    %329 = vector.shape_cast %328 : vector<1x128xf32> to vector<1x1x128xf32>
    %cst_111 = arith.constant dense<0.000000e+00> : vector<1xf32>
    %330 = vector.multi_reduction <add>, %329, %cst_111 [1, 2] : vector<1x1x128xf32> to vector<1xf32>
    %331 = vector.shape_cast %330 : vector<1xf32> to vector<1x1x1xf32>
    %332 = vector.extract %331[0, 0, 0] : f32 from vector<1x1x1xf32>
    %cst_112 = arith.constant 1.000000e-30 : f32
    %333 = arith.maximumf %332, %cst_112 : f32
    %334 = math.rsqrt %333 : f32
    %335 = vector.broadcast %c9_i32 : i32 to vector<1x128xi32>
    %336 = arith.cmpi sgt, %1, %335 : vector<1x128xi32>
    %cst_113 = arith.constant 0.000000e+00 : f32
    %337 = vector.broadcast %cst_113 : f32 to vector<1x128xf32>
    %338 = arith.select %336, %324, %337 : vector<1x128xi1>, vector<1x128xf32>
    %339 = vector.broadcast %334 : f32 to vector<1x128xf32>
    %340 = arith.mulf %338, %339 : vector<1x128xf32>
    %cst_114 = arith.constant 0.000000e+00 : f32
    %341 = vector.shape_cast %340 : vector<1x128xf32> to vector<1x128xf32>
    %342 = vector.broadcast %341 : vector<1x128xf32> to vector<24x128xf32>
    %343 = vector.broadcast %cst_114 : f32 to vector<24x128xf32>
    %344 = arith.select %24, %342, %343 : vector<24x128xi1>, vector<24x128xf32>
    %cst_115 = arith.constant dense<0.000000e+00> : vector<24xf32>
    %345 = vector.multi_reduction <add>, %344, %cst_115 [1] : vector<24x128xf32> to vector<24xf32>
    %346 = vector.shape_cast %345 : vector<24xf32> to vector<24x1xf32>
    %c0_116 = arith.constant 0 : index
    %c0_117 = arith.constant 0 : index
    %347 = vector.load %arg3[%c0_116, %c0_117] : memref<24x128xf32, #tpu.memory_space<vmem>>, vector<24x128xf32>
    %348 = vector.broadcast %346 : vector<24x1xf32> to vector<24x128xf32>
    %349 = vector.broadcast %340 : vector<1x128xf32> to vector<24x128xf32>
    %350 = arith.mulf %348, %349 : vector<24x128xf32>
    %351 = arith.subf %347, %350 : vector<24x128xf32>
    %c0_118 = arith.constant 0 : index
    %c0_119 = arith.constant 0 : index
    %352 = vector.load %arg3[%c0_118, %c0_119] : memref<24x128xf32, #tpu.memory_space<vmem>>, vector<24x128xf32>
    tpu.vector_store %arg3[%c0_118, %c0_119], %351 {strides = array<i32>} : memref<24x128xf32, #tpu.memory_space<vmem>>, vector<24x128xf32>,
    %353 = math.log %333 : f32
    %354 = vector.broadcast %353 : f32 to vector<1x1xf32>
    %355 = arith.addf %322, %354 : vector<1x1xf32>
    %c10_i32 = arith.constant 10 : i32
    %356 = arith.index_cast %c10_i32 : i32 to index
    %c0_120 = arith.constant 0 : index
    %357 = vector.load %arg3[%356, %c0_120] : memref<24x128xf32, #tpu.memory_space<vmem>>, vector<1x128xf32>
    %358 = vector.broadcast %c10_i32 : i32 to vector<1x128xi32>
    %359 = arith.cmpi eq, %1, %358 : vector<1x128xi32>
    %cst_121 = arith.constant 0.000000e+00 : f32
    %360 = vector.broadcast %cst_121 : f32 to vector<1x128xf32>
    %361 = arith.select %359, %357, %360 : vector<1x128xi1>, vector<1x128xf32>
    %362 = vector.shape_cast %361 : vector<1x128xf32> to vector<1x1x128xf32>
    %cst_122 = arith.constant dense<0.000000e+00> : vector<1xf32>
    %363 = vector.multi_reduction <add>, %362, %cst_122 [1, 2] : vector<1x1x128xf32> to vector<1xf32>
    %364 = vector.shape_cast %363 : vector<1xf32> to vector<1x1x1xf32>
    %365 = vector.extract %364[0, 0, 0] : f32 from vector<1x1x1xf32>
    %cst_123 = arith.constant 1.000000e-30 : f32
    %366 = arith.maximumf %365, %cst_123 : f32
    %367 = math.rsqrt %366 : f32
    %368 = vector.broadcast %c10_i32 : i32 to vector<1x128xi32>
    %369 = arith.cmpi sgt, %1, %368 : vector<1x128xi32>
    %cst_124 = arith.constant 0.000000e+00 : f32
    %370 = vector.broadcast %cst_124 : f32 to vector<1x128xf32>
    %371 = arith.select %369, %357, %370 : vector<1x128xi1>, vector<1x128xf32>
    %372 = vector.broadcast %367 : f32 to vector<1x128xf32>
    %373 = arith.mulf %371, %372 : vector<1x128xf32>
    %cst_125 = arith.constant 0.000000e+00 : f32
    %374 = vector.shape_cast %373 : vector<1x128xf32> to vector<1x128xf32>
    %375 = vector.broadcast %374 : vector<1x128xf32> to vector<24x128xf32>
    %376 = vector.broadcast %cst_125 : f32 to vector<24x128xf32>
    %377 = arith.select %24, %375, %376 : vector<24x128xi1>, vector<24x128xf32>
    %cst_126 = arith.constant dense<0.000000e+00> : vector<24xf32>
    %378 = vector.multi_reduction <add>, %377, %cst_126 [1] : vector<24x128xf32> to vector<24xf32>
    %379 = vector.shape_cast %378 : vector<24xf32> to vector<24x1xf32>
    %c0_127 = arith.constant 0 : index
    %c0_128 = arith.constant 0 : index
    %380 = vector.load %arg3[%c0_127, %c0_128] : memref<24x128xf32, #tpu.memory_space<vmem>>, vector<24x128xf32>
    %381 = vector.broadcast %379 : vector<24x1xf32> to vector<24x128xf32>
    %382 = vector.broadcast %373 : vector<1x128xf32> to vector<24x128xf32>
    %383 = arith.mulf %381, %382 : vector<24x128xf32>
    %384 = arith.subf %380, %383 : vector<24x128xf32>
    %c0_129 = arith.constant 0 : index
    %c0_130 = arith.constant 0 : index
    %385 = vector.load %arg3[%c0_129, %c0_130] : memref<24x128xf32, #tpu.memory_space<vmem>>, vector<24x128xf32>
    tpu.vector_store %arg3[%c0_129, %c0_130], %384 {strides = array<i32>} : memref<24x128xf32, #tpu.memory_space<vmem>>, vector<24x128xf32>,
    %386 = math.log %366 : f32
    %387 = vector.broadcast %386 : f32 to vector<1x1xf32>
    %388 = arith.addf %355, %387 : vector<1x1xf32>
    %c11_i32 = arith.constant 11 : i32
    %389 = arith.index_cast %c11_i32 : i32 to index
    %c0_131 = arith.constant 0 : index
    %390 = vector.load %arg3[%389, %c0_131] : memref<24x128xf32, #tpu.memory_space<vmem>>, vector<1x128xf32>
    %391 = vector.broadcast %c11_i32 : i32 to vector<1x128xi32>
    %392 = arith.cmpi eq, %1, %391 : vector<1x128xi32>
    %cst_132 = arith.constant 0.000000e+00 : f32
    %393 = vector.broadcast %cst_132 : f32 to vector<1x128xf32>
    %394 = arith.select %392, %390, %393 : vector<1x128xi1>, vector<1x128xf32>
    %395 = vector.shape_cast %394 : vector<1x128xf32> to vector<1x1x128xf32>
    %cst_133 = arith.constant dense<0.000000e+00> : vector<1xf32>
    %396 = vector.multi_reduction <add>, %395, %cst_133 [1, 2] : vector<1x1x128xf32> to vector<1xf32>
    %397 = vector.shape_cast %396 : vector<1xf32> to vector<1x1x1xf32>
    %398 = vector.extract %397[0, 0, 0] : f32 from vector<1x1x1xf32>
    %cst_134 = arith.constant 1.000000e-30 : f32
    %399 = arith.maximumf %398, %cst_134 : f32
    %400 = math.rsqrt %399 : f32
    %401 = vector.broadcast %c11_i32 : i32 to vector<1x128xi32>
    %402 = arith.cmpi sgt, %1, %401 : vector<1x128xi32>
    %cst_135 = arith.constant 0.000000e+00 : f32
    %403 = vector.broadcast %cst_135 : f32 to vector<1x128xf32>
    %404 = arith.select %402, %390, %403 : vector<1x128xi1>, vector<1x128xf32>
    %405 = vector.broadcast %400 : f32 to vector<1x128xf32>
    %406 = arith.mulf %404, %405 : vector<1x128xf32>
    %cst_136 = arith.constant 0.000000e+00 : f32
    %407 = vector.shape_cast %406 : vector<1x128xf32> to vector<1x128xf32>
    %408 = vector.broadcast %407 : vector<1x128xf32> to vector<24x128xf32>
    %409 = vector.broadcast %cst_136 : f32 to vector<24x128xf32>
    %410 = arith.select %24, %408, %409 : vector<24x128xi1>, vector<24x128xf32>
    %cst_137 = arith.constant dense<0.000000e+00> : vector<24xf32>
    %411 = vector.multi_reduction <add>, %410, %cst_137 [1] : vector<24x128xf32> to vector<24xf32>
    %412 = vector.shape_cast %411 : vector<24xf32> to vector<24x1xf32>
    %c0_138 = arith.constant 0 : index
    %c0_139 = arith.constant 0 : index
    %413 = vector.load %arg3[%c0_138, %c0_139] : memref<24x128xf32, #tpu.memory_space<vmem>>, vector<24x128xf32>
    %414 = vector.broadcast %412 : vector<24x1xf32> to vector<24x128xf32>
    %415 = vector.broadcast %406 : vector<1x128xf32> to vector<24x128xf32>
    %416 = arith.mulf %414, %415 : vector<24x128xf32>
    %417 = arith.subf %413, %416 : vector<24x128xf32>
    %c0_140 = arith.constant 0 : index
    %c0_141 = arith.constant 0 : index
    %418 = vector.load %arg3[%c0_140, %c0_141] : memref<24x128xf32, #tpu.memory_space<vmem>>, vector<24x128xf32>
    tpu.vector_store %arg3[%c0_140, %c0_141], %417 {strides = array<i32>} : memref<24x128xf32, #tpu.memory_space<vmem>>, vector<24x128xf32>,
    %419 = math.log %399 : f32
    %420 = vector.broadcast %419 : f32 to vector<1x1xf32>
    %421 = arith.addf %388, %420 : vector<1x1xf32>
    %c12_i32 = arith.constant 12 : i32
    %422 = arith.index_cast %c12_i32 : i32 to index
    %c0_142 = arith.constant 0 : index
    %423 = vector.load %arg3[%422, %c0_142] : memref<24x128xf32, #tpu.memory_space<vmem>>, vector<1x128xf32>
    %424 = vector.broadcast %c12_i32 : i32 to vector<1x128xi32>
    %425 = arith.cmpi eq, %1, %424 : vector<1x128xi32>
    %cst_143 = arith.constant 0.000000e+00 : f32
    %426 = vector.broadcast %cst_143 : f32 to vector<1x128xf32>
    %427 = arith.select %425, %423, %426 : vector<1x128xi1>, vector<1x128xf32>
    %428 = vector.shape_cast %427 : vector<1x128xf32> to vector<1x1x128xf32>
    %cst_144 = arith.constant dense<0.000000e+00> : vector<1xf32>
    %429 = vector.multi_reduction <add>, %428, %cst_144 [1, 2] : vector<1x1x128xf32> to vector<1xf32>
    %430 = vector.shape_cast %429 : vector<1xf32> to vector<1x1x1xf32>
    %431 = vector.extract %430[0, 0, 0] : f32 from vector<1x1x1xf32>
    %cst_145 = arith.constant 1.000000e-30 : f32
    %432 = arith.maximumf %431, %cst_145 : f32
    %433 = math.rsqrt %432 : f32
    %434 = vector.broadcast %c12_i32 : i32 to vector<1x128xi32>
    %435 = arith.cmpi sgt, %1, %434 : vector<1x128xi32>
    %cst_146 = arith.constant 0.000000e+00 : f32
    %436 = vector.broadcast %cst_146 : f32 to vector<1x128xf32>
    %437 = arith.select %435, %423, %436 : vector<1x128xi1>, vector<1x128xf32>
    %438 = vector.broadcast %433 : f32 to vector<1x128xf32>
    %439 = arith.mulf %437, %438 : vector<1x128xf32>
    %cst_147 = arith.constant 0.000000e+00 : f32
    %440 = vector.shape_cast %439 : vector<1x128xf32> to vector<1x128xf32>
    %441 = vector.broadcast %440 : vector<1x128xf32> to vector<24x128xf32>
    %442 = vector.broadcast %cst_147 : f32 to vector<24x128xf32>
    %443 = arith.select %24, %441, %442 : vector<24x128xi1>, vector<24x128xf32>
    %cst_148 = arith.constant dense<0.000000e+00> : vector<24xf32>
    %444 = vector.multi_reduction <add>, %443, %cst_148 [1] : vector<24x128xf32> to vector<24xf32>
    %445 = vector.shape_cast %444 : vector<24xf32> to vector<24x1xf32>
    %c0_149 = arith.constant 0 : index
    %c0_150 = arith.constant 0 : index
    %446 = vector.load %arg3[%c0_149, %c0_150] : memref<24x128xf32, #tpu.memory_space<vmem>>, vector<24x128xf32>
    %447 = vector.broadcast %445 : vector<24x1xf32> to vector<24x128xf32>
    %448 = vector.broadcast %439 : vector<1x128xf32> to vector<24x128xf32>
    %449 = arith.mulf %447, %448 : vector<24x128xf32>
    %450 = arith.subf %446, %449 : vector<24x128xf32>
    %c0_151 = arith.constant 0 : index
    %c0_152 = arith.constant 0 : index
    %451 = vector.load %arg3[%c0_151, %c0_152] : memref<24x128xf32, #tpu.memory_space<vmem>>, vector<24x128xf32>
    tpu.vector_store %arg3[%c0_151, %c0_152], %450 {strides = array<i32>} : memref<24x128xf32, #tpu.memory_space<vmem>>, vector<24x128xf32>,
    %452 = math.log %432 : f32
    %453 = vector.broadcast %452 : f32 to vector<1x1xf32>
    %454 = arith.addf %421, %453 : vector<1x1xf32>
    %c13_i32 = arith.constant 13 : i32
    %455 = arith.index_cast %c13_i32 : i32 to index
    %c0_153 = arith.constant 0 : index
    %456 = vector.load %arg3[%455, %c0_153] : memref<24x128xf32, #tpu.memory_space<vmem>>, vector<1x128xf32>
    %457 = vector.broadcast %c13_i32 : i32 to vector<1x128xi32>
    %458 = arith.cmpi eq, %1, %457 : vector<1x128xi32>
    %cst_154 = arith.constant 0.000000e+00 : f32
    %459 = vector.broadcast %cst_154 : f32 to vector<1x128xf32>
    %460 = arith.select %458, %456, %459 : vector<1x128xi1>, vector<1x128xf32>
    %461 = vector.shape_cast %460 : vector<1x128xf32> to vector<1x1x128xf32>
    %cst_155 = arith.constant dense<0.000000e+00> : vector<1xf32>
    %462 = vector.multi_reduction <add>, %461, %cst_155 [1, 2] : vector<1x1x128xf32> to vector<1xf32>
    %463 = vector.shape_cast %462 : vector<1xf32> to vector<1x1x1xf32>
    %464 = vector.extract %463[0, 0, 0] : f32 from vector<1x1x1xf32>
    %cst_156 = arith.constant 1.000000e-30 : f32
    %465 = arith.maximumf %464, %cst_156 : f32
    %466 = math.rsqrt %465 : f32
    %467 = vector.broadcast %c13_i32 : i32 to vector<1x128xi32>
    %468 = arith.cmpi sgt, %1, %467 : vector<1x128xi32>
    %cst_157 = arith.constant 0.000000e+00 : f32
    %469 = vector.broadcast %cst_157 : f32 to vector<1x128xf32>
    %470 = arith.select %468, %456, %469 : vector<1x128xi1>, vector<1x128xf32>
    %471 = vector.broadcast %466 : f32 to vector<1x128xf32>
    %472 = arith.mulf %470, %471 : vector<1x128xf32>
    %cst_158 = arith.constant 0.000000e+00 : f32
    %473 = vector.shape_cast %472 : vector<1x128xf32> to vector<1x128xf32>
    %474 = vector.broadcast %473 : vector<1x128xf32> to vector<24x128xf32>
    %475 = vector.broadcast %cst_158 : f32 to vector<24x128xf32>
    %476 = arith.select %24, %474, %475 : vector<24x128xi1>, vector<24x128xf32>
    %cst_159 = arith.constant dense<0.000000e+00> : vector<24xf32>
    %477 = vector.multi_reduction <add>, %476, %cst_159 [1] : vector<24x128xf32> to vector<24xf32>
    %478 = vector.shape_cast %477 : vector<24xf32> to vector<24x1xf32>
    %c0_160 = arith.constant 0 : index
    %c0_161 = arith.constant 0 : index
    %479 = vector.load %arg3[%c0_160, %c0_161] : memref<24x128xf32, #tpu.memory_space<vmem>>, vector<24x128xf32>
    %480 = vector.broadcast %478 : vector<24x1xf32> to vector<24x128xf32>
    %481 = vector.broadcast %472 : vector<1x128xf32> to vector<24x128xf32>
    %482 = arith.mulf %480, %481 : vector<24x128xf32>
    %483 = arith.subf %479, %482 : vector<24x128xf32>
    %c0_162 = arith.constant 0 : index
    %c0_163 = arith.constant 0 : index
    %484 = vector.load %arg3[%c0_162, %c0_163] : memref<24x128xf32, #tpu.memory_space<vmem>>, vector<24x128xf32>
    tpu.vector_store %arg3[%c0_162, %c0_163], %483 {strides = array<i32>} : memref<24x128xf32, #tpu.memory_space<vmem>>, vector<24x128xf32>,
    %485 = math.log %465 : f32
    %486 = vector.broadcast %485 : f32 to vector<1x1xf32>
    %487 = arith.addf %454, %486 : vector<1x1xf32>
    %c14_i32 = arith.constant 14 : i32
    %488 = arith.index_cast %c14_i32 : i32 to index
    %c0_164 = arith.constant 0 : index
    %489 = vector.load %arg3[%488, %c0_164] : memref<24x128xf32, #tpu.memory_space<vmem>>, vector<1x128xf32>
    %490 = vector.broadcast %c14_i32 : i32 to vector<1x128xi32>
    %491 = arith.cmpi eq, %1, %490 : vector<1x128xi32>
    %cst_165 = arith.constant 0.000000e+00 : f32
    %492 = vector.broadcast %cst_165 : f32 to vector<1x128xf32>
    %493 = arith.select %491, %489, %492 : vector<1x128xi1>, vector<1x128xf32>
    %494 = vector.shape_cast %493 : vector<1x128xf32> to vector<1x1x128xf32>
    %cst_166 = arith.constant dense<0.000000e+00> : vector<1xf32>
    %495 = vector.multi_reduction <add>, %494, %cst_166 [1, 2] : vector<1x1x128xf32> to vector<1xf32>
    %496 = vector.shape_cast %495 : vector<1xf32> to vector<1x1x1xf32>
    %497 = vector.extract %496[0, 0, 0] : f32 from vector<1x1x1xf32>
    %cst_167 = arith.constant 1.000000e-30 : f32
    %498 = arith.maximumf %497, %cst_167 : f32
    %499 = math.rsqrt %498 : f32
    %500 = vector.broadcast %c14_i32 : i32 to vector<1x128xi32>
    %501 = arith.cmpi sgt, %1, %500 : vector<1x128xi32>
    %cst_168 = arith.constant 0.000000e+00 : f32
    %502 = vector.broadcast %cst_168 : f32 to vector<1x128xf32>
    %503 = arith.select %501, %489, %502 : vector<1x128xi1>, vector<1x128xf32>
    %504 = vector.broadcast %499 : f32 to vector<1x128xf32>
    %505 = arith.mulf %503, %504 : vector<1x128xf32>
    %cst_169 = arith.constant 0.000000e+00 : f32
    %506 = vector.shape_cast %505 : vector<1x128xf32> to vector<1x128xf32>
    %507 = vector.broadcast %506 : vector<1x128xf32> to vector<24x128xf32>
    %508 = vector.broadcast %cst_169 : f32 to vector<24x128xf32>
    %509 = arith.select %24, %507, %508 : vector<24x128xi1>, vector<24x128xf32>
    %cst_170 = arith.constant dense<0.000000e+00> : vector<24xf32>
    %510 = vector.multi_reduction <add>, %509, %cst_170 [1] : vector<24x128xf32> to vector<24xf32>
    %511 = vector.shape_cast %510 : vector<24xf32> to vector<24x1xf32>
    %c0_171 = arith.constant 0 : index
    %c0_172 = arith.constant 0 : index
    %512 = vector.load %arg3[%c0_171, %c0_172] : memref<24x128xf32, #tpu.memory_space<vmem>>, vector<24x128xf32>
    %513 = vector.broadcast %511 : vector<24x1xf32> to vector<24x128xf32>
    %514 = vector.broadcast %505 : vector<1x128xf32> to vector<24x128xf32>
    %515 = arith.mulf %513, %514 : vector<24x128xf32>
    %516 = arith.subf %512, %515 : vector<24x128xf32>
    %c0_173 = arith.constant 0 : index
    %c0_174 = arith.constant 0 : index
    %517 = vector.load %arg3[%c0_173, %c0_174] : memref<24x128xf32, #tpu.memory_space<vmem>>, vector<24x128xf32>
    tpu.vector_store %arg3[%c0_173, %c0_174], %516 {strides = array<i32>} : memref<24x128xf32, #tpu.memory_space<vmem>>, vector<24x128xf32>,
    %518 = math.log %498 : f32
    %519 = vector.broadcast %518 : f32 to vector<1x1xf32>
    %520 = arith.addf %487, %519 : vector<1x1xf32>
    %c15_i32 = arith.constant 15 : i32
    %521 = arith.index_cast %c15_i32 : i32 to index
    %c0_175 = arith.constant 0 : index
    %522 = vector.load %arg3[%521, %c0_175] : memref<24x128xf32, #tpu.memory_space<vmem>>, vector<1x128xf32>
    %523 = vector.broadcast %c15_i32 : i32 to vector<1x128xi32>
    %524 = arith.cmpi eq, %1, %523 : vector<1x128xi32>
    %cst_176 = arith.constant 0.000000e+00 : f32
    %525 = vector.broadcast %cst_176 : f32 to vector<1x128xf32>
    %526 = arith.select %524, %522, %525 : vector<1x128xi1>, vector<1x128xf32>
    %527 = vector.shape_cast %526 : vector<1x128xf32> to vector<1x1x128xf32>
    %cst_177 = arith.constant dense<0.000000e+00> : vector<1xf32>
    %528 = vector.multi_reduction <add>, %527, %cst_177 [1, 2] : vector<1x1x128xf32> to vector<1xf32>
    %529 = vector.shape_cast %528 : vector<1xf32> to vector<1x1x1xf32>
    %530 = vector.extract %529[0, 0, 0] : f32 from vector<1x1x1xf32>
    %cst_178 = arith.constant 1.000000e-30 : f32
    %531 = arith.maximumf %530, %cst_178 : f32
    %532 = math.rsqrt %531 : f32
    %533 = vector.broadcast %c15_i32 : i32 to vector<1x128xi32>
    %534 = arith.cmpi sgt, %1, %533 : vector<1x128xi32>
    %cst_179 = arith.constant 0.000000e+00 : f32
    %535 = vector.broadcast %cst_179 : f32 to vector<1x128xf32>
    %536 = arith.select %534, %522, %535 : vector<1x128xi1>, vector<1x128xf32>
    %537 = vector.broadcast %532 : f32 to vector<1x128xf32>
    %538 = arith.mulf %536, %537 : vector<1x128xf32>
    %cst_180 = arith.constant 0.000000e+00 : f32
    %539 = vector.shape_cast %538 : vector<1x128xf32> to vector<1x128xf32>
    %540 = vector.broadcast %539 : vector<1x128xf32> to vector<24x128xf32>
    %541 = vector.broadcast %cst_180 : f32 to vector<24x128xf32>
    %542 = arith.select %24, %540, %541 : vector<24x128xi1>, vector<24x128xf32>
    %cst_181 = arith.constant dense<0.000000e+00> : vector<24xf32>
    %543 = vector.multi_reduction <add>, %542, %cst_181 [1] : vector<24x128xf32> to vector<24xf32>
    %544 = vector.shape_cast %543 : vector<24xf32> to vector<24x1xf32>
    %c0_182 = arith.constant 0 : index
    %c0_183 = arith.constant 0 : index
    %545 = vector.load %arg3[%c0_182, %c0_183] : memref<24x128xf32, #tpu.memory_space<vmem>>, vector<24x128xf32>
    %546 = vector.broadcast %544 : vector<24x1xf32> to vector<24x128xf32>
    %547 = vector.broadcast %538 : vector<1x128xf32> to vector<24x128xf32>
    %548 = arith.mulf %546, %547 : vector<24x128xf32>
    %549 = arith.subf %545, %548 : vector<24x128xf32>
    %c0_184 = arith.constant 0 : index
    %c0_185 = arith.constant 0 : index
    %550 = vector.load %arg3[%c0_184, %c0_185] : memref<24x128xf32, #tpu.memory_space<vmem>>, vector<24x128xf32>
    tpu.vector_store %arg3[%c0_184, %c0_185], %549 {strides = array<i32>} : memref<24x128xf32, #tpu.memory_space<vmem>>, vector<24x128xf32>,
    %551 = math.log %531 : f32
    %552 = vector.broadcast %551 : f32 to vector<1x1xf32>
    %553 = arith.addf %520, %552 : vector<1x1xf32>
    %c16_i32_186 = arith.constant 16 : i32
    %554 = vector.extract %553[0, 0] : f32 from vector<1x1xf32>
    %c16 = arith.constant 16 : index
    %c0_187 = arith.constant 0 : index
    %555 = vector.load %arg3[%c16, %c0_187] : memref<24x128xf32, #tpu.memory_space<vmem>>, vector<1x128xf32>
    %c16_i32_188 = arith.constant 16 : i32
    %556 = vector.broadcast %c16_i32_188 : i32 to vector<1x128xi32>
    %557 = arith.cmpi eq, %1, %556 : vector<1x128xi32>
    %cst_189 = arith.constant 0.000000e+00 : f32
    %558 = vector.broadcast %cst_189 : f32 to vector<1x128xf32>
    %559 = arith.select %557, %555, %558 : vector<1x128xi1>, vector<1x128xf32>
    %560 = vector.shape_cast %559 : vector<1x128xf32> to vector<1x1x128xf32>
    %cst_190 = arith.constant dense<0.000000e+00> : vector<1xf32>
    %561 = vector.multi_reduction <add>, %560, %cst_190 [1, 2] : vector<1x1x128xf32> to vector<1xf32>
    %562 = vector.shape_cast %561 : vector<1xf32> to vector<1x1x1xf32>
    %563 = vector.extract %562[0, 0, 0] : f32 from vector<1x1x1xf32>
    %cst_191 = arith.constant 0.000000e+00 : f32
    %564 = arith.subf %cst_191, %563 : f32
    %cst_192 = arith.constant -5.000000e-01 : f32
    %565 = arith.mulf %cst_192, %564 : f32
    %cst_193 = arith.constant 5.000000e-01 : f32
    %566 = arith.mulf %cst_193, %554 : f32
    %567 = arith.subf %565, %566 : f32
    %cst_194 = arith.constant 14.7030163 : f32
    %568 = arith.subf %567, %cst_194 : f32
    %cst_195 = arith.constant 1.600000e+01 : f32
    %569 = arith.divf %568, %cst_195 : f32
    %cst_196 = arith.constant 0.000000e+00 : f32
    %570 = arith.subf %cst_196, %569 : f32
    %c0_197 = arith.constant 0 : index
    %c0_198 = arith.constant 0 : index
    %571 = memref.load %arg2[%c0_197, %c0_198] : memref<1x1xf32, #tpu.memory_space<smem>>
    memref.store %570, %arg2[%c0_197, %c0_198] : memref<1x1xf32, #tpu.memory_space<smem>>
    return
  }
}

</mosaic_0001>

<bundles_post_ra>
// kernel: tpu_custom_call.1
= control target key start
LH: loop header
LB: loop body
LE: loop exit
PB: predicated region body
PF: predicated region fallthrough
CT: control target
= control target key end

     0   :  { %7 = vsyncpa [#allocation4], 0  ;;  %s1719_s0 = inlined_call_operand.hbm [shape: f32[24,128], index: 0, kind: input, shape index: {}]   ;;  %s1720_s1 = inlined_call_operand.hbm [shape: f32[1,128], index: 1, kind: input, shape index: {}]   ;;  %s1721_s2 = inlined_call_operand.hbm [shape: f32[1,1], index: 2, kind: output, shape index: {}]  }
   0x1   :  { %8 = vsyncpa [#allocation7], 0 }
   0x2   :  { %9 = vsyncpa [#allocation5], 0  ;;  %s14_s11 = sshll.u32 %s1719_s0, 4  ;;  %s1313_s12 = smov [#allocation3]   ;;  %s15_s11 = int_to_ptr.hbm [resolvable:$true] %s14_s11 }
   0x3   :  { %s16_s13 = sshll.u32 %s1313_s12, 4  ;;  %s28_s16 = sshll.u32 %s1720_s1, 4  ;;  %s17_s13 = int_to_ptr.vmem [resolvable:$true] %s16_s13  ;;  %s29_s16 = int_to_ptr.hbm [resolvable:$true] %s28_s16 }
   0x4   :  { %s1314_s17 = smov 128   ;;  %s1315_s18 = smov 8  }
   0x5   :  { %22 = dma.hbm_to_vmem [thread:$0]  %s15_s11, 384, %s17_s13, [#allocation4], %s1314_s17, %s1314_s17, %s1315_s18  }
   0x6   :  { %s1316_s19 = smov [#allocation6]  }
   0x7   :  { %s30_s20 = sshll.u32 %s1316_s19, 4  ;;  %s31_s20 = int_to_ptr.vmem [resolvable:$true] %s30_s20 }
   0x8   :  { %33 = dma.hbm_to_vmem [thread:$0]  %s29_s16, 16, %s31_s20, [#allocation7]  }
   0x9   :  { %1307 = dma.done.wait [#allocation4], 384  }
   0xa   :  { %1308 = vsyncadd [#allocation4], 4294966912 }
   0xb   :  { %1309 = dma.done.wait [#allocation7], 16  }
   0xc   :  { %1310 = vsyncadd [#allocation7], 4294967280  ;;  %v48_v0 = vld [vmem:[#allocation6] sm:$0x1]  ;;  %vm50_vm0 = vcmask 1040384   ;;  %v42_v10 = vlaneseq  ;;  %v76_v12 = vld [vmem:[#allocation3] sm:$0xff] }
   0xd   :  { %v49_v1 = vmul.f32 %v48_v0, %v48_v0  ;;  %s1317_s21 = smov 1e-30  }
   0xe   :  { %v1342_v11 = vand.u32 127, %v42_v10  ;;  %v1352_v38 = vshrl.u32 %v42_v10, 7 }
   0xf   :  { %v51_v2 = vsel %vm50_vm0, %v49_v1, 0.0 }
  0x10   :  { %52 = vadd.xlane.f32.xlu0 %v51_v2  ;;  %vm64_vm1 = vcmp.lt.s32.totalorder %v1342_v11, 16  ;;  %vm93_vm2 = vcmp.eq.s32.totalorder %v1342_v11, 0  ;;  %vm118_vm6 = vcmp.gt.s32.totalorder %v1342_v11, 0  ;;  %vm1356_vm7 = vcmp.eq.s32.totalorder %v1352_v38, %v1342_v11 }
  0x11   :  { %vm151_vm8 = vcmp.eq.s32.totalorder %v1342_v11, 1  ;;  %vm176_vm12 = vcmp.gt.s32.totalorder %v1342_v11, 1  ;;  %vm209_vm13 = vcmp.eq.s32.totalorder %v1342_v11, 2 }
  0x83   :  { %v53_v3 = vpop.xlane.xlu0 %52 }
  0x84   :  { %v54_v4 = vrot.slane %v53_v3, 4 }
  0x86   :  { %v55_v5 = vadd.f32 %v54_v4, %v53_v3 }
  0x88   :  { %v56_v6 = vrot.slane %v55_v5, 2 }
  0x8a   :  { %v57_v7 = vadd.f32 %v56_v6, %v55_v5 }
  0x8c   :  { %v58_v8 = vrot.slane %v57_v7, 1 }
  0x8e   :  { %v59_v9 = vadd.f32 %v58_v8, %v57_v7 }
  0x90   :  { %1069 = vpush %v59_v9 }
  0xc1   :  { %s1070_s0 = spop %1069 }
  0xc2   :  { %v79_v13 = vstv %s1070_s0 }
  0xc3   :  { %v1345_v14 = vsel %vm64_vm1, %v79_v13, 0.0 }
  0xc4   :  { %v83_v15 = vadd.f32 %v1345_v14, %v76_v12 }
  0xc6   :  { %86 = vst [vmem:[#allocation2] sm:$0xff] %v83_v15 }
  0xcd   :  { %v92_v16 = vld [vmem:[#allocation2] sm:$0x1] }
  0xce   :  { %v94_v17 = vsel %vm93_vm2, %v92_v16, 0.0  ;;  %v119_v36 = vsel %vm118_vm6, %v92_v16, 0.0  ;;  %vm234_vm2 = vcmp.gt.s32.totalorder %v1342_v11, 2 }
  0xcf   :  { %v95_v18 = vsel %vm50_vm0, %v94_v17, 0.0 }
  0xd0   :  { %96 = vadd.xlane.f32.xlu0 %v95_v18 }
 0x143   :  { %v97_v19 = vpop.xlane.xlu0 %96 }
 0x144   :  { %v98_v20 = vrot.slane %v97_v19, 4 }
 0x146   :  { %v99_v21 = vadd.f32 %v98_v20, %v97_v19 }
 0x148   :  { %v100_v22 = vrot.slane %v99_v21, 2 }
 0x14a   :  { %v101_v23 = vadd.f32 %v100_v22, %v99_v21 }
 0x14c   :  { %v102_v24 = vrot.slane %v101_v23, 1 }
 0x14e   :  { %v103_v25 = vadd.f32 %v102_v24, %v101_v23 }
 0x150   :  { %1071 = vpush %v103_v25 }
 0x181   :  { %s1072_s1 = spop %1071 }
 0x182   :  { %s105_s22 = smax.f32 %s1317_s21, %s1072_s1 }
 0x183   :  { %v106_v26 = vstv %s105_s22 }
 0x184   :  { %1180 = vrsqrt.f32 %v106_v26  ;;  %vm113_vm4 = vweird.f32 %v106_v26 }
 0x185   :  { %1182 = vlog2.f32 %v106_v26 }
 0x18a   :  { %v1181_v27 = vpop.eup %1180 }
 0x18b   :  { %v108_v28 = vmul.f32 %v1181_v27, %v106_v26  ;;  %vm114_vm3 = vweird.f32 %v1181_v27  ;;  %v1183_v32 = vpop.eup %1182 }
 0x18c   :  { %vm115_vm5 = vmor %vm113_vm4, %vm114_vm3  ;;  %v146_v35 = vmul.f32 0.6931472, %v1183_v32  ;;  %vm267_vm3 = vcmp.eq.s32.totalorder %v1342_v11, 3 }
 0x18d   :  { %v109_v29 = vmul.f32 %v1181_v27, %v108_v28 }
 0x18f   :  { %v110_v30 = vmul.f32 0.5, %v109_v29 }
 0x191   :  { %v111_v31 = vsub.f32 1.5, %v110_v30 }
 0x193   :  { %v112_v33 = vmul.f32 %v1181_v27, %v111_v31 }
 0x195   :  { %v116_v34 = vsel %vm115_vm5, %v1181_v27, %v112_v33 }
 0x196   :  { %1073 = vpush %v116_v34 }
 0x197   :  { %1075 = vpush %v146_v35 }
 0x1c7   :  { %s1074_s23 = spop %1073 }
 0x1c8   :  { %v120_v37 = vstv %s1074_s23  ;;  %s1368_s24 = spop %1075 }
 0x1c9   :  { %v121_v39 = vmul.f32 %v120_v37, %v119_v36 }
 0x1cb   :  { %v1360_v41 = vperm.slane %v121_v39, 0 }
 0x1cd   :  { %v123_v42 = vsel %vm1356_vm7, %v1360_v41, 0.0 }
 0x1ce   :  { %126 = vadd.xlane.f32.xlu1 %v123_v42 }
 0x241   :  { %v127_v43 = vpop.xlane.xlu1 %126 }
 0x242   :  { %v135_v44 = vmul.f32 %v127_v43, %v1360_v41 }
 0x244   :  { %v138_v45 = vsub.f32 %v83_v15, %v135_v44 }
 0x246   :  { %141 = vst [vmem:[#allocation2] sm:$0xff] %v138_v45 }
 0x24d   :  { %v150_v46 = vld [vmem:[#allocation2 + $0x1] sm:$0x1] }
 0x24e   :  { %v152_v47 = vsel %vm151_vm8, %v150_v46, 0.0  ;;  %v177_v2 = vsel %vm176_vm12, %v150_v46, 0.0  ;;  %vm292_vm8 = vcmp.gt.s32.totalorder %v1342_v11, 3 }
 0x24f   :  { %v153_v48 = vsel %vm50_vm0, %v152_v47, 0.0 }
 0x250   :  { %154 = vadd.xlane.f32.xlu1 %v153_v48 }
 0x2c3   :  { %v155_v49 = vpop.xlane.xlu1 %154 }
 0x2c4   :  { %v156_v50 = vrot.slane %v155_v49, 4 }
 0x2c6   :  { %v157_v51 = vadd.f32 %v156_v50, %v155_v49 }
 0x2c8   :  { %v158_v52 = vrot.slane %v157_v51, 2 }
 0x2ca   :  { %v159_v53 = vadd.f32 %v158_v52, %v157_v51 }
 0x2cc   :  { %v160_v54 = vrot.slane %v159_v53, 1 }
 0x2ce   :  { %v161_v55 = vadd.f32 %v160_v54, %v159_v53 }
 0x2d0   :  { %1077 = vpush %v161_v55 }
 0x301   :  { %s1078_s25 = spop %1077 }
 0x302   :  { %s163_s26 = smax.f32 %s1317_s21, %s1078_s25 }
 0x303   :  { %v164_v56 = vstv %s163_s26 }
 0x304   :  { %1184 = vrsqrt.f32 %v164_v56  ;;  %vm171_vm10 = vweird.f32 %v164_v56 }
 0x305   :  { %1186 = vlog2.f32 %v164_v56 }
 0x30a   :  { %v1185_v57 = vpop.eup %1184 }
 0x30b   :  { %v166_v58 = vmul.f32 %v1185_v57, %v164_v56  ;;  %vm172_vm9 = vweird.f32 %v1185_v57  ;;  %v1187_v62 = vpop.eup %1186 }
 0x30c   :  { %vm173_vm11 = vmor %vm171_vm10, %vm172_vm9  ;;  %v204_v1 = vmul.f32 0.6931472, %v1187_v62  ;;  %vm325_vm9 = vcmp.eq.s32.totalorder %v1342_v11, 4 }
 0x30d   :  { %v167_v59 = vmul.f32 %v1185_v57, %v166_v58 }
 0x30f   :  { %v168_v60 = vmul.f32 0.5, %v167_v59 }
 0x311   :  { %v169_v61 = vsub.f32 1.5, %v168_v60 }
 0x313   :  { %v170_v63 = vmul.f32 %v1185_v57, %v169_v61 }
 0x315   :  { %v174_v0 = vsel %vm173_vm11, %v1185_v57, %v170_v63 }
 0x316   :  { %1079 = vpush %v174_v0 }
 0x317   :  { %1081 = vpush %v204_v1 }
 0x347   :  { %s1080_s27 = spop %1079 }
 0x348   :  { %v178_v3 = vstv %s1080_s27  ;;  %s1380_s28 = spop %1081 }
 0x349   :  { %v179_v4 = vmul.f32 %v178_v3, %v177_v2 }
 0x34b   :  { %v1372_v5 = vperm.slane %v179_v4, 0 }
 0x34d   :  { %v181_v6 = vsel %vm1356_vm7, %v1372_v5, 0.0 }
 0x34e   :  { %184 = vadd.xlane.f32.xlu2 %v181_v6 }
 0x3c1   :  { %v185_v7 = vpop.xlane.xlu2 %184 }
 0x3c2   :  { %v193_v8 = vmul.f32 %v185_v7, %v1372_v5 }
 0x3c4   :  { %v196_v9 = vsub.f32 %v138_v45, %v193_v8 }
 0x3c6   :  { %199 = vst [vmem:[#allocation2] sm:$0xff] %v196_v9 }
 0x3cd   :  { %v208_v10 = vld [vmem:[#allocation2 + $0x2] sm:$0x1] }
 0x3ce   :  { %v210_v12 = vsel %vm209_vm13, %v208_v10, 0.0  ;;  %v235_v32 = vsel %vm234_vm2, %v208_v10, 0.0  ;;  %vm350_vm13 = vcmp.gt.s32.totalorder %v1342_v11, 4 }
 0x3cf   :  { %v211_v13 = vsel %vm50_vm0, %v210_v12, 0.0 }
 0x3d0   :  { %212 = vadd.xlane.f32.xlu2 %v211_v13 }
 0x443   :  { %v213_v15 = vpop.xlane.xlu2 %212 }
 0x444   :  { %v214_v16 = vrot.slane %v213_v15, 4 }
 0x446   :  { %v215_v17 = vadd.f32 %v214_v16, %v213_v15 }
 0x448   :  { %v216_v18 = vrot.slane %v215_v17, 2 }
 0x44a   :  { %v217_v19 = vadd.f32 %v216_v18, %v215_v17 }
 0x44c   :  { %v218_v20 = vrot.slane %v217_v19, 1 }
 0x44e   :  { %v219_v21 = vadd.f32 %v218_v20, %v217_v19 }
 0x450   :  { %1083 = vpush %v219_v21 }
 0x481   :  { %s1084_s29 = spop %1083 }
 0x482   :  { %s221_s30 = smax.f32 %s1317_s21, %s1084_s29 }
 0x483   :  { %v222_v22 = vstv %s221_s30 }
 0x484   :  { %1188 = vrsqrt.f32 %v222_v22  ;;  %vm229_vm15 = vweird.f32 %v222_v22 }
 0x485   :  { %1190 = vlog2.f32 %v222_v22 }
 0x48a   :  { %v1189_v23 = vpop.eup %1188 }
 0x48b   :  { %v224_v24 = vmul.f32 %v1189_v23, %v222_v22  ;;  %vm230_vm14 = vweird.f32 %v1189_v23  ;;  %v1191_v28 = vpop.eup %1190 }
 0x48c   :  { %vm231_vm1 = vmor %vm229_vm15, %vm230_vm14  ;;  %v262_v31 = vmul.f32 0.6931472, %v1191_v28  ;;  %vm383_vm14 = vcmp.eq.s32.totalorder %v1342_v11, 5 }
 0x48d   :  { %v225_v25 = vmul.f32 %v1189_v23, %v224_v24 }
 0x48f   :  { %v226_v26 = vmul.f32 0.5, %v225_v25 }
 0x491   :  { %v227_v27 = vsub.f32 1.5, %v226_v26 }
 0x493   :  { %v228_v29 = vmul.f32 %v1189_v23, %v227_v27 }
 0x495   :  { %v232_v30 = vsel %vm231_vm1, %v1189_v23, %v228_v29 }
 0x496   :  { %1085 = vpush %v232_v30 }
 0x497   :  { %1087 = vpush %v262_v31 }
 0x4c7   :  { %s1086_s3 = spop %1085 }
 0x4c8   :  { %v236_v33 = vstv %s1086_s3  ;;  %s1392_s4 = spop %1087 }
 0x4c9   :  { %v237_v34 = vmul.f32 %v236_v33, %v235_v32 }
 0x4cb   :  { %v1384_v35 = vperm.slane %v237_v34, 0 }
 0x4cd   :  { %v239_v36 = vsel %vm1356_vm7, %v1384_v35, 0.0 }
 0x4ce   :  { %242 = vadd.xlane.f32.xlu0 %v239_v36 }
 0x541   :  { %v243_v37 = vpop.xlane.xlu0 %242 }
 0x542   :  { %v251_v39 = vmul.f32 %v243_v37, %v1384_v35 }
 0x544   :  { %v254_v42 = vsub.f32 %v196_v9, %v251_v39 }
 0x546   :  { %257 = vst [vmem:[#allocation2] sm:$0xff] %v254_v42 }
 0x54d   :  { %v266_v43 = vld [vmem:[#allocation2 + $0x3] sm:$0x1] }
 0x54e   :  { %v268_v44 = vsel %vm267_vm3, %v266_v43, 0.0  ;;  %v293_v63 = vsel %vm292_vm8, %v266_v43, 0.0  ;;  %vm408_vm3 = vcmp.gt.s32.totalorder %v1342_v11, 5 }
 0x54f   :  { %v269_v45 = vsel %vm50_vm0, %v268_v44, 0.0 }
 0x550   :  { %270 = vadd.xlane.f32.xlu1 %v269_v45 }
 0x5c3   :  { %v271_v46 = vpop.xlane.xlu1 %270 }
 0x5c4   :  { %v272_v47 = vrot.slane %v271_v46, 4 }
 0x5c6   :  { %v273_v48 = vadd.f32 %v272_v47, %v271_v46 }
 0x5c8   :  { %v274_v49 = vrot.slane %v273_v48, 2 }
 0x5ca   :  { %v275_v50 = vadd.f32 %v274_v49, %v273_v48 }
 0x5cc   :  { %v276_v51 = vrot.slane %v275_v50, 1 }
 0x5ce   :  { %v277_v52 = vadd.f32 %v276_v51, %v275_v50 }
 0x5d0   :  { %1089 = vpush %v277_v52 }
 0x601   :  { %s1090_s5 = spop %1089 }
 0x602   :  { %s279_s6 = smax.f32 %s1317_s21, %s1090_s5 }
 0x603   :  { %v280_v53 = vstv %s279_s6 }
 0x604   :  { %1192 = vrsqrt.f32 %v280_v53  ;;  %vm287_vm5 = vweird.f32 %v280_v53 }
 0x605   :  { %1194 = vlog2.f32 %v280_v53 }
 0x60a   :  { %v1193_v54 = vpop.eup %1192 }
 0x60b   :  { %v282_v55 = vmul.f32 %v1193_v54, %v280_v53  ;;  %vm288_vm4 = vweird.f32 %v1193_v54  ;;  %v1195_v59 = vpop.eup %1194 }
 0x60c   :  { %vm289_vm6 = vmor %vm287_vm5, %vm288_vm4  ;;  %v320_v62 = vmul.f32 0.6931472, %v1195_v59  ;;  %vm441_vm4 = vcmp.eq.s32.totalorder %v1342_v11, 6 }
 0x60d   :  { %v283_v56 = vmul.f32 %v1193_v54, %v282_v55 }
 0x60f   :  { %v284_v57 = vmul.f32 0.5, %v283_v56 }
 0x611   :  { %v285_v58 = vsub.f32 1.5, %v284_v57 }
 0x613   :  { %v286_v60 = vmul.f32 %v1193_v54, %v285_v58 }
 0x615   :  { %v290_v61 = vsel %vm289_vm6, %v1193_v54, %v286_v60 }
 0x616   :  { %1091 = vpush %v290_v61 }
 0x617   :  { %1093 = vpush %v320_v62 }
 0x647   :  { %s1092_s7 = spop %1091 }
 0x648   :  { %v294_v0 = vstv %s1092_s7  ;;  %s1404_s8 = spop %1093 }
 0x649   :  { %v295_v1 = vmul.f32 %v294_v0, %v293_v63 }
 0x64b   :  { %v1396_v2 = vperm.slane %v295_v1, 0 }
 0x64d   :  { %v297_v3 = vsel %vm1356_vm7, %v1396_v2, 0.0 }
 0x64e   :  { %300 = vadd.xlane.f32.xlu2 %v297_v3 }
 0x6c1   :  { %v301_v4 = vpop.xlane.xlu2 %300 }
 0x6c2   :  { %v309_v6 = vmul.f32 %v301_v4, %v1396_v2 }
 0x6c4   :  { %v312_v7 = vsub.f32 %v254_v42, %v309_v6 }
 0x6c6   :  { %315 = vst [vmem:[#allocation2] sm:$0xff] %v312_v7 }
 0x6cd   :  { %v324_v8 = vld [vmem:[#allocation2 + $0x4] sm:$0x1] }
 0x6ce   :  { %v326_v9 = vsel %vm325_vm9, %v324_v8, 0.0  ;;  %v351_v30 = vsel %vm350_vm13, %v324_v8, 0.0 }
 0x6cf   :  { %v327_v10 = vsel %vm50_vm0, %v326_v9, 0.0 }
 0x6d0   :  { %328 = vadd.xlane.f32.xlu0 %v327_v10 }
 0x743   :  { %v329_v12 = vpop.xlane.xlu0 %328 }
 0x744   :  { %v330_v13 = vrot.slane %v329_v12, 4 }
 0x746   :  { %v331_v15 = vadd.f32 %v330_v13, %v329_v12  ;;  %v44_v12 = vadd.s32 8, %v1352_v38 }
 0x748   :  { %v332_v16 = vrot.slane %v331_v15, 2  ;;  %vm1430_vm5 = vcmp.eq.s32.totalorder %v44_v12, %v1342_v11 }
 0x74a   :  { %v333_v17 = vadd.f32 %v332_v16, %v331_v15  ;;  %v124_v15 = vsel %vm1430_vm5, %v1360_v41, 0.0  ;;  %v298_v16 = vsel %vm1430_vm5, %v1396_v2, 0.0 }
 0x74c   :  { %v334_v18 = vrot.slane %v333_v17, 1 }
 0x74e   :  { %v335_v19 = vadd.f32 %v334_v18, %v333_v17 }
 0x750   :  { %1095 = vpush %v335_v19 }
 0x781   :  { %s1096_s9 = spop %1095 }
 0x782   :  { %s337_s10 = smax.f32 %s1317_s21, %s1096_s9 }
 0x783   :  { %v338_v20 = vstv %s337_s10 }
 0x784   :  { %1196 = vrsqrt.f32 %v338_v20  ;;  %vm345_vm11 = vweird.f32 %v338_v20 }
 0x785   :  { %1198 = vlog2.f32 %v338_v20 }
 0x78a   :  { %v1197_v21 = vpop.eup %1196 }
 0x78b   :  { %v340_v22 = vmul.f32 %v1197_v21, %v338_v20  ;;  %vm346_vm10 = vweird.f32 %v1197_v21  ;;  %v1199_v26 = vpop.eup %1198 }
 0x78c   :  { %vm347_vm12 = vmor %vm345_vm11, %vm346_vm10  ;;  %v378_v29 = vmul.f32 0.6931472, %v1199_v26  ;;  %vm466_vm10 = vcmp.gt.s32.totalorder %v1342_v11, 6  ;;  %vm499_vm11 = vcmp.eq.s32.totalorder %v1342_v11, 7 }
 0x78d   :  { %v341_v23 = vmul.f32 %v1197_v21, %v340_v22 }
 0x78f   :  { %v342_v24 = vmul.f32 0.5, %v341_v23 }
 0x791   :  { %v343_v25 = vsub.f32 1.5, %v342_v24 }
 0x793   :  { %v344_v27 = vmul.f32 %v1197_v21, %v343_v25 }
 0x795   :  { %v348_v28 = vsel %vm347_vm12, %v1197_v21, %v344_v27 }
 0x796   :  { %1097 = vpush %v348_v28 }
 0x797   :  { %1099 = vpush %v378_v29 }
 0x7c7   :  { %s1098_s11 = spop %1097 }
 0x7c8   :  { %v352_v31 = vstv %s1098_s11  ;;  %s1416_s12 = spop %1099 }
 0x7c9   :  { %v353_v32 = vmul.f32 %v352_v31, %v351_v30 }
 0x7cb   :  { %v1408_v33 = vperm.slane %v353_v32, 0 }
 0x7cd   :  { %v355_v34 = vsel %vm1356_vm7, %v1408_v33, 0.0 }
 0x7ce   :  { %358 = vadd.xlane.f32.xlu1 %v355_v34 }
 0x841   :  { %v359_v36 = vpop.xlane.xlu1 %358 }
 0x842   :  { %v367_v37 = vmul.f32 %v359_v36, %v1408_v33 }
 0x844   :  { %v370_v39 = vsub.f32 %v312_v7, %v367_v37 }
 0x846   :  { %373 = vst [vmem:[#allocation2] sm:$0xff] %v370_v39 }
 0x84d   :  { %v382_v42 = vld [vmem:[#allocation2 + $0x5] sm:$0x1] }
 0x84e   :  { %v384_v43 = vsel %vm383_vm14, %v382_v42, 0.0  ;;  %v409_v62 = vsel %vm408_vm3, %v382_v42, 0.0 }
 0x84f   :  { %v385_v44 = vsel %vm50_vm0, %v384_v43, 0.0 }
 0x850   :  { %386 = vadd.xlane.f32.xlu2 %v385_v44 }
 0x8c3   :  { %v387_v45 = vpop.xlane.xlu2 %386 }
 0x8c4   :  { %v388_v46 = vrot.slane %v387_v45, 4 }
 0x8c6   :  { %v389_v47 = vadd.f32 %v388_v46, %v387_v45  ;;  %v182_v45 = vsel %vm1430_vm5, %v1372_v5, 0.0  ;;  %v356_v46 = vsel %vm1430_vm5, %v1408_v33, 0.0 }
 0x8c8   :  { %v390_v48 = vrot.slane %v389_v47, 2 }
 0x8ca   :  { %v391_v49 = vadd.f32 %v390_v48, %v389_v47 }
 0x8cc   :  { %v392_v50 = vrot.slane %v391_v49, 1 }
 0x8ce   :  { %v393_v51 = vadd.f32 %v392_v50, %v391_v49 }
 0x8d0   :  { %1101 = vpush %v393_v51 }
 0x901   :  { %s1102_s13 = spop %1101 }
 0x902   :  { %s395_s14 = smax.f32 %s1317_s21, %s1102_s13 }
 0x903   :  { %v396_v52 = vstv %s395_s14 }
 0x904   :  { %1200 = vrsqrt.f32 %v396_v52  ;;  %vm403_vm1 = vweird.f32 %v396_v52 }
 0x905   :  { %1202 = vlog2.f32 %v396_v52 }
 0x90a   :  { %v1201_v53 = vpop.eup %1200 }
 0x90b   :  { %v398_v54 = vmul.f32 %v1201_v53, %v396_v52  ;;  %vm404_vm15 = vweird.f32 %v1201_v53  ;;  %v1203_v58 = vpop.eup %1202 }
 0x90c   :  { %vm405_vm2 = vmor %vm403_vm1, %vm404_vm15  ;;  %v436_v61 = vmul.f32 0.6931472, %v1203_v58  ;;  %vm524_vm15 = vcmp.gt.s32.totalorder %v1342_v11, 7  ;;  %vm557_vm1 = vcmp.eq.s32.totalorder %v1342_v11, 8 }
 0x90d   :  { %v399_v55 = vmul.f32 %v1201_v53, %v398_v54 }
 0x90f   :  { %v400_v56 = vmul.f32 0.5, %v399_v55 }
 0x911   :  { %v401_v57 = vsub.f32 1.5, %v400_v56 }
 0x913   :  { %v402_v59 = vmul.f32 %v1201_v53, %v401_v57 }
 0x915   :  { %v406_v60 = vsel %vm405_vm2, %v1201_v53, %v402_v59  ;;  %v240_v53 = vsel %vm1430_vm5, %v1384_v35, 0.0 }
 0x916   :  { %1103 = vpush %v406_v60 }
 0x917   :  { %1105 = vpush %v436_v61 }
 0x947   :  { %s1104_s15 = spop %1103 }
 0x948   :  { %v410_v63 = vstv %s1104_s15  ;;  %s1440_s16 = spop %1105 }
 0x949   :  { %v411_v0 = vmul.f32 %v410_v63, %v409_v62 }
 0x94b   :  { %v1420_v1 = vperm.slane %v411_v0, 0 }
 0x94d   :  { %v413_v3 = vsel %vm1356_vm7, %v1420_v1, 0.0  ;;  %v414_v54 = vsel %vm1430_vm5, %v1420_v1, 0.0 }
 0x94e   :  { %416 = vadd.xlane.f32.xlu0 %v413_v3 }
 0x9c1   :  { %v417_v4 = vpop.xlane.xlu0 %416 }
 0x9c2   :  { %v425_v6 = vmul.f32 %v417_v4, %v1420_v1 }
 0x9c4   :  { %v428_v7 = vsub.f32 %v370_v39, %v425_v6 }
 0x9c6   :  { %431 = vst [vmem:[#allocation2] sm:$0xff] %v428_v7 }
 0x9cd   :  { %v440_v8 = vld [vmem:[#allocation2 + $0x6] sm:$0x1] }
 0x9ce   :  { %v442_v9 = vsel %vm441_vm4, %v440_v8, 0.0  ;;  %v467_v36 = vsel %vm466_vm10, %v440_v8, 0.0 }
 0x9cf   :  { %v443_v10 = vsel %vm50_vm0, %v442_v9, 0.0 }
 0x9d0   :  { %444 = vadd.xlane.f32.xlu1 %v443_v10 }
 0x9d8   :  { %128 = vadd.xlane.f32.xlu1 %v124_v15 }
 0x9e0   :  { %302 = vadd.xlane.f32.xlu1 %v298_v16 }
 0xa43   :  { %v445_v17 = vpop.xlane.xlu1 %444 }
 0xa44   :  { %v446_v18 = vrot.slane %v445_v17, 4 }
 0xa46   :  { %v447_v19 = vadd.f32 %v446_v18, %v445_v17 }
 0xa48   :  { %v448_v20 = vrot.slane %v447_v19, 2 }
 0xa4a   :  { %v449_v21 = vadd.f32 %v448_v20, %v447_v19  ;;  %v77_v20 = vld [vmem:[#allocation3 + $0x8] sm:$0xff] }
 0xa4b   :  { %v129_v19 = vpop.xlane.xlu1 %128 }
 0xa4c   :  { %v450_v22 = vrot.slane %v449_v21, 1 }
 0xa4e   :  { %v451_v23 = vadd.f32 %v450_v22, %v449_v21  ;;  %v136_v22 = vmul.f32 %v129_v19, %v1360_v41 }
 0xa50   :  { %1107 = vpush %v451_v23 }
 0xa81   :  { %s1108_s17 = spop %1107 }
 0xa82   :  { %s453_s18 = smax.f32 %s1317_s21, %s1108_s17 }
 0xa83   :  { %v454_v24 = vstv %s453_s18 }
 0xa84   :  { %1204 = vrsqrt.f32 %v454_v24  ;;  %vm461_vm8 = vweird.f32 %v454_v24 }
 0xa85   :  { %1206 = vlog2.f32 %v454_v24 }
 0xa8a   :  { %v1205_v25 = vpop.eup %1204 }
 0xa8b   :  { %v456_v26 = vmul.f32 %v1205_v25, %v454_v24  ;;  %vm462_vm6 = vweird.f32 %v1205_v25  ;;  %v1207_v30 = vpop.eup %1206  ;;  %v84_v24 = vadd.f32 %v1345_v14, %v77_v20 }
 0xa8c   :  { %vm463_vm9 = vmor %vm461_vm8, %vm462_vm6  ;;  %v494_v34 = vmul.f32 0.6931472, %v1207_v30  ;;  %vm582_vm6 = vcmp.gt.s32.totalorder %v1342_v11, 8  ;;  %vm615_vm8 = vcmp.eq.s32.totalorder %v1342_v11, 9 }
 0xa8d   :  { %v457_v27 = vmul.f32 %v1205_v25, %v456_v26  ;;  %v139_v26 = vsub.f32 %v84_v24, %v136_v22 }
 0xa8f   :  { %v458_v28 = vmul.f32 0.5, %v457_v27 }
 0xa91   :  { %v459_v29 = vsub.f32 1.5, %v458_v28 }
 0xa93   :  { %v460_v31 = vmul.f32 %v1205_v25, %v459_v29  ;;  %v303_v29 = vpop.xlane.xlu1 %302 }
 0xa95   :  { %v464_v32 = vsel %vm463_vm9, %v1205_v25, %v460_v31  ;;  %v310_v31 = vmul.f32 %v303_v29, %v1396_v2 }
 0xa96   :  { %1109 = vpush %v464_v32 }
 0xa97   :  { %1111 = vpush %v494_v34 }
 0xac7   :  { %s1110_s19 = spop %1109 }
 0xac8   :  { %v468_v37 = vstv %s1110_s19  ;;  %s1467_s20 = spop %1111 }
 0xac9   :  { %v469_v39 = vmul.f32 %v468_v37, %v467_v36 }
 0xacb   :  { %v1444_v42 = vperm.slane %v469_v39, 0 }
 0xacd   :  { %v472_v43 = vsel %vm1430_vm5, %v1444_v42, 0.0  ;;  %v471_v44 = vsel %vm1356_vm7, %v1444_v42, 0.0 }
 0xace   :  { %476 = vadd.xlane.f32.xlu1 %v472_v43  ;;  %474 = vadd.xlane.f32.xlu2 %v471_v44 }
 0xad6   :  { %186 = vadd.xlane.f32.xlu2 %v182_v45 }
 0xade   :  { %360 = vadd.xlane.f32.xlu2 %v356_v46 }
 0xb41   :  { %v475_v47 = vpop.xlane.xlu2 %474  ;;  %v477_v44 = vpop.xlane.xlu1 %476 }
 0xb42   :  { %v483_v48 = vmul.f32 %v475_v47, %v1444_v42  ;;  %v484_v45 = vmul.f32 %v477_v44, %v1444_v42 }
 0xb44   :  { %v486_v49 = vsub.f32 %v428_v7, %v483_v48 }
 0xb46   :  { %489 = vst [vmem:[#allocation2] sm:$0xff] %v486_v49 }
 0xb49   :  { %v187_v21 = vpop.xlane.xlu2 %186 }
 0xb4a   :  { %v194_v25 = vmul.f32 %v187_v21, %v1372_v5 }
 0xb4c   :  { %v197_v28 = vsub.f32 %v139_v26, %v194_v25 }
 0xb4d   :  { %v498_v50 = vld [vmem:[#allocation2 + $0x7] sm:$0x1] }
 0xb4e   :  { %v500_v51 = vsel %vm499_vm11, %v498_v50, 0.0  ;;  %v525_v12 = vsel %vm524_vm15, %v498_v50, 0.0 }
 0xb4f   :  { %v501_v52 = vsel %vm50_vm0, %v500_v51, 0.0 }
 0xb50   :  { %502 = vadd.xlane.f32.xlu0 %v501_v52 }
 0xb51   :  { %v361_v32 = vpop.xlane.xlu2 %360 }
 0xb52   :  { %v368_v37 = vmul.f32 %v361_v32, %v1408_v33 }
 0xb58   :  { %244 = vadd.xlane.f32.xlu0 %v240_v53 }
 0xb60   :  { %418 = vadd.xlane.f32.xlu0 %v414_v54 }
 0xbc3   :  { %v503_v55 = vpop.xlane.xlu0 %502 }
 0xbc4   :  { %v504_v56 = vrot.slane %v503_v55, 4 }
 0xbc6   :  { %v505_v57 = vadd.f32 %v504_v56, %v503_v55 }
 0xbc8   :  { %v506_v58 = vrot.slane %v505_v57, 2 }
 0xbca   :  { %v507_v59 = vadd.f32 %v506_v58, %v505_v57 }
 0xbcb   :  { %v245_v23 = vpop.xlane.xlu0 %244 }
 0xbcc   :  { %v508_v60 = vrot.slane %v507_v59, 1  ;;  %v252_v27 = vmul.f32 %v245_v23, %v1384_v35 }
 0xbce   :  { %v509_v61 = vadd.f32 %v508_v60, %v507_v59  ;;  %v255_v30 = vsub.f32 %v197_v28, %v252_v27 }
 0xbd0   :  { %1113 = vpush %v509_v61  ;;  %v313_v36 = vsub.f32 %v255_v30, %v310_v31 }
 0xbd2   :  { %v371_v43 = vsub.f32 %v313_v36, %v368_v37 }
 0xbd3   :  { %v419_v34 = vpop.xlane.xlu0 %418 }
 0xbd4   :  { %v426_v39 = vmul.f32 %v419_v34, %v1420_v1 }
 0xbd6   :  { %v429_v14 = vsub.f32 %v371_v43, %v426_v39 }
 0xbd8   :  { %v487_v47 = vsub.f32 %v429_v14, %v484_v45 }
 0xc01   :  { %s1114_s0 = spop %1113 }
 0xc02   :  { %s511_s1 = smax.f32 %s1317_s21, %s1114_s0 }
 0xc03   :  { %v512_v62 = vstv %s511_s1 }
 0xc04   :  { %1208 = vrsqrt.f32 %v512_v62  ;;  %vm519_vm13 = vweird.f32 %v512_v62 }
 0xc05   :  { %1210 = vlog2.f32 %v512_v62 }
 0xc0a   :  { %v1209_v63 = vpop.eup %1208 }
 0xc0b   :  { %v514_v0 = vmul.f32 %v1209_v63, %v512_v62  ;;  %vm520_vm12 = vweird.f32 %v1209_v63  ;;  %v1211_v7 = vpop.eup %1210 }
 0xc0c   :  { %vm521_vm14 = vmor %vm519_vm13, %vm520_vm12  ;;  %v552_v10 = vmul.f32 0.6931472, %v1211_v7  ;;  %vm640_vm12 = vcmp.gt.s32.totalorder %v1342_v11, 9  ;;  %vm673_vm13 = vcmp.eq.s32.totalorder %v1342_v11, 10 }
 0xc0d   :  { %v515_v3 = vmul.f32 %v1209_v63, %v514_v0 }
 0xc0f   :  { %v516_v4 = vmul.f32 0.5, %v515_v3 }
 0xc11   :  { %v517_v6 = vsub.f32 1.5, %v516_v4 }
 0xc13   :  { %v518_v8 = vmul.f32 %v1209_v63, %v517_v6 }
 0xc15   :  { %v522_v9 = vsel %vm521_vm14, %v1209_v63, %v518_v8 }
 0xc16   :  { %1115 = vpush %v522_v9 }
 0xc17   :  { %1117 = vpush %v552_v10 }
 0xc47   :  { %s1116_s22 = spop %1115 }
 0xc48   :  { %v526_v15 = vstv %s1116_s22  ;;  %s1487_s23 = spop %1117 }
 0xc49   :  { %v527_v16 = vmul.f32 %v526_v15, %v525_v12 }
 0xc4b   :  { %v1471_v17 = vperm.slane %v527_v16, 0 }
 0xc4d   :  { %v530_v18 = vsel %vm1430_vm5, %v1471_v17, 0.0 }
 0xc4e   :  { %534 = vadd.xlane.f32.xlu2 %v530_v18 }
 0xcc1   :  { %v535_v46 = vpop.xlane.xlu2 %534 }
 0xcc2   :  { %v542_v48 = vmul.f32 %v535_v46, %v1471_v17 }
 0xcc4   :  { %v545_v49 = vsub.f32 %v487_v47, %v542_v48 }
 0xcc6   :  { %548 = vst [vmem:[#allocation2 + $0x8] sm:$0xff] %v545_v49 }
 0xccd   :  { %v556_v50 = vld [vmem:[#allocation2 + $0x8] sm:$0x1] }
 0xcce   :  { %v558_v51 = vsel %vm557_vm1, %v556_v50, 0.0  ;;  %v583_v9 = vsel %vm582_vm6, %v556_v50, 0.0 }
 0xccf   :  { %v559_v52 = vsel %vm50_vm0, %v558_v51, 0.0 }
 0xcd0   :  { %560 = vadd.xlane.f32.xlu0 %v559_v52 }
 0xd43   :  { %v561_v53 = vpop.xlane.xlu0 %560 }
 0xd44   :  { %v562_v54 = vrot.slane %v561_v53, 4 }
 0xd46   :  { %v563_v55 = vadd.f32 %v562_v54, %v561_v53 }
 0xd48   :  { %v564_v56 = vrot.slane %v563_v55, 2 }
 0xd4a   :  { %v565_v57 = vadd.f32 %v564_v56, %v563_v55 }
 0xd4c   :  { %v566_v58 = vrot.slane %v565_v57, 1 }
 0xd4e   :  { %v567_v59 = vadd.f32 %v566_v58, %v565_v57 }
 0xd50   :  { %1119 = vpush %v567_v59 }
 0xd81   :  { %s1120_s25 = spop %1119 }
 0xd82   :  { %s569_s26 = smax.f32 %s1317_s21, %s1120_s25 }
 0xd83   :  { %v570_v60 = vstv %s569_s26 }
 0xd84   :  { %1212 = vrsqrt.f32 %v570_v60  ;;  %vm577_vm3 = vweird.f32 %v570_v60 }
 0xd85   :  { %1214 = vlog2.f32 %v570_v60 }
 0xd8a   :  { %v1213_v61 = vpop.eup %1212 }
 0xd8b   :  { %v572_v62 = vmul.f32 %v1213_v61, %v570_v60  ;;  %vm578_vm2 = vweird.f32 %v1213_v61  ;;  %v1215_v4 = vpop.eup %1214 }
 0xd8c   :  { %vm579_vm4 = vmor %vm577_vm3, %vm578_vm2  ;;  %v610_v8 = vmul.f32 0.6931472, %v1215_v4  ;;  %vm698_vm2 = vcmp.gt.s32.totalorder %v1342_v11, 10  ;;  %vm731_vm3 = vcmp.eq.s32.totalorder %v1342_v11, 11 }
 0xd8d   :  { %v573_v63 = vmul.f32 %v1213_v61, %v572_v62 }
 0xd8f   :  { %v574_v0 = vmul.f32 0.5, %v573_v63 }
 0xd91   :  { %v575_v3 = vsub.f32 1.5, %v574_v0 }
 0xd93   :  { %v576_v6 = vmul.f32 %v1213_v61, %v575_v3 }
 0xd95   :  { %v580_v7 = vsel %vm579_vm4, %v1213_v61, %v576_v6 }
 0xd96   :  { %1121 = vpush %v580_v7 }
 0xd97   :  { %1123 = vpush %v610_v8 }
 0xdc7   :  { %s1122_s27 = spop %1121 }
 0xdc8   :  { %v584_v10 = vstv %s1122_s27  ;;  %s1499_s29 = spop %1123 }
 0xdc9   :  { %v585_v12 = vmul.f32 %v584_v10, %v583_v9 }
 0xdcb   :  { %v1491_v15 = vperm.slane %v585_v12, 0 }
 0xdcd   :  { %v588_v16 = vsel %vm1430_vm5, %v1491_v15, 0.0 }
 0xdce   :  { %592 = vadd.xlane.f32.xlu1 %v588_v16 }
 0xe41   :  { %v593_v18 = vpop.xlane.xlu1 %592 }
 0xe42   :  { %v600_v19 = vmul.f32 %v593_v18, %v1491_v15 }
 0xe44   :  { %v603_v20 = vsub.f32 %v545_v49, %v600_v19 }
 0xe46   :  { %606 = vst [vmem:[#allocation2 + $0x8] sm:$0xff] %v603_v20 }
 0xe4d   :  { %v614_v21 = vld [vmem:[#allocation2 + $0x9] sm:$0x1] }
 0xe4e   :  { %v616_v22 = vsel %vm615_vm8, %v614_v21, 0.0  ;;  %v641_v46 = vsel %vm640_vm12, %v614_v21, 0.0 }
 0xe4f   :  { %v617_v23 = vsel %vm50_vm0, %v616_v22, 0.0 }
 0xe50   :  { %618 = vadd.xlane.f32.xlu2 %v617_v23 }
 0xec3   :  { %v619_v24 = vpop.xlane.xlu2 %618 }
 0xec4   :  { %v620_v25 = vrot.slane %v619_v24, 4 }
 0xec6   :  { %v621_v26 = vadd.f32 %v620_v25, %v619_v24 }
 0xec8   :  { %v622_v27 = vrot.slane %v621_v26, 2 }
 0xeca   :  { %v623_v28 = vadd.f32 %v622_v27, %v621_v26 }
 0xecc   :  { %v624_v29 = vrot.slane %v623_v28, 1 }
 0xece   :  { %v625_v30 = vadd.f32 %v624_v29, %v623_v28 }
 0xed0   :  { %1125 = vpush %v625_v30 }
 0xf01   :  { %s1126_s30 = spop %1125 }
 0xf02   :  { %s627_s3 = smax.f32 %s1317_s21, %s1126_s30 }
 0xf03   :  { %v628_v31 = vstv %s627_s3 }
 0xf04   :  { %1216 = vrsqrt.f32 %v628_v31  ;;  %vm635_vm10 = vweird.f32 %v628_v31 }
 0xf05   :  { %1218 = vlog2.f32 %v628_v31 }
 0xf0a   :  { %v1217_v32 = vpop.eup %1216 }
 0xf0b   :  { %v630_v34 = vmul.f32 %v1217_v32, %v628_v31  ;;  %vm636_vm9 = vweird.f32 %v1217_v32  ;;  %v1219_v43 = vpop.eup %1218 }
 0xf0c   :  { %vm637_vm11 = vmor %vm635_vm10, %vm636_vm9  ;;  %v668_v45 = vmul.f32 0.6931472, %v1219_v43  ;;  %vm756_vm9 = vcmp.gt.s32.totalorder %v1342_v11, 11  ;;  %vm789_vm10 = vcmp.eq.s32.totalorder %v1342_v11, 12 }
 0xf0d   :  { %v631_v36 = vmul.f32 %v1217_v32, %v630_v34 }
 0xf0f   :  { %v632_v37 = vmul.f32 0.5, %v631_v36 }
 0xf11   :  { %v633_v39 = vsub.f32 1.5, %v632_v37 }
 0xf13   :  { %v634_v44 = vmul.f32 %v1217_v32, %v633_v39 }
 0xf15   :  { %v638_v14 = vsel %vm637_vm11, %v1217_v32, %v634_v44 }
 0xf16   :  { %1127 = vpush %v638_v14 }
 0xf17   :  { %1129 = vpush %v668_v45 }
 0xf47   :  { %s1128_s5 = spop %1127 }
 0xf48   :  { %v642_v47 = vstv %s1128_s5  ;;  %s1511_s6 = spop %1129 }
 0xf49   :  { %v643_v48 = vmul.f32 %v642_v47, %v641_v46 }
 0xf4b   :  { %v1503_v49 = vperm.slane %v643_v48, 0 }
 0xf4d   :  { %v646_v50 = vsel %vm1430_vm5, %v1503_v49, 0.0 }
 0xf4e   :  { %650 = vadd.xlane.f32.xlu0 %v646_v50 }
 0xfc1   :  { %v651_v51 = vpop.xlane.xlu0 %650 }
 0xfc2   :  { %v658_v52 = vmul.f32 %v651_v51, %v1503_v49 }
 0xfc4   :  { %v661_v53 = vsub.f32 %v603_v20, %v658_v52 }
 0xfc6   :  { %664 = vst [vmem:[#allocation2 + $0x8] sm:$0xff] %v661_v53 }
 0xfcd   :  { %v672_v54 = vld [vmem:[#allocation2 + $0xa] sm:$0x1] }
 0xfce   :  { %v674_v55 = vsel %vm673_vm13, %v672_v54, 0.0  ;;  %v699_v18 = vsel %vm698_vm2, %v672_v54, 0.0 }
 0xfcf   :  { %v675_v56 = vsel %vm50_vm0, %v674_v55, 0.0 }
 0xfd0   :  { %676 = vadd.xlane.f32.xlu1 %v675_v56 }
0x1043   :  { %v677_v57 = vpop.xlane.xlu1 %676 }
0x1044   :  { %v678_v58 = vrot.slane %v677_v57, 4 }
0x1046   :  { %v679_v59 = vadd.f32 %v678_v58, %v677_v57 }
0x1048   :  { %v680_v60 = vrot.slane %v679_v59, 2 }
0x104a   :  { %v681_v61 = vadd.f32 %v680_v60, %v679_v59 }
0x104c   :  { %v682_v62 = vrot.slane %v681_v61, 1 }
0x104e   :  { %v683_v63 = vadd.f32 %v682_v62, %v681_v61 }
0x1050   :  { %1131 = vpush %v683_v63 }
0x1081   :  { %s1132_s7 = spop %1131 }
0x1082   :  { %s685_s9 = smax.f32 %s1317_s21, %s1132_s7 }
0x1083   :  { %v686_v0 = vstv %s685_s9 }
0x1084   :  { %1220 = vrsqrt.f32 %v686_v0  ;;  %vm693_vm15 = vweird.f32 %v686_v0 }
0x1085   :  { %1222 = vlog2.f32 %v686_v0 }
0x108a   :  { %v1221_v3 = vpop.eup %1220 }
0x108b   :  { %v688_v4 = vmul.f32 %v1221_v3, %v686_v0  ;;  %vm694_vm14 = vweird.f32 %v1221_v3  ;;  %v1223_v9 = vpop.eup %1222 }
0x108c   :  { %vm695_vm1 = vmor %vm693_vm15, %vm694_vm14  ;;  %v726_v16 = vmul.f32 0.6931472, %v1223_v9  ;;  %vm814_vm14 = vcmp.gt.s32.totalorder %v1342_v11, 12  ;;  %vm847_vm15 = vcmp.eq.s32.totalorder %v1342_v11, 13 }
0x108d   :  { %v689_v6 = vmul.f32 %v1221_v3, %v688_v4 }
0x108f   :  { %v690_v7 = vmul.f32 0.5, %v689_v6 }
0x1091   :  { %v691_v8 = vsub.f32 1.5, %v690_v7 }
0x1093   :  { %v692_v10 = vmul.f32 %v1221_v3, %v691_v8 }
0x1095   :  { %v696_v12 = vsel %vm695_vm1, %v1221_v3, %v692_v10 }
0x1096   :  { %1133 = vpush %v696_v12 }
0x1097   :  { %1135 = vpush %v726_v16 }
0x10c7   :  { %s1134_s10 = spop %1133 }
0x10c8   :  { %v700_v19 = vstv %s1134_s10  ;;  %s1523_s11 = spop %1135 }
0x10c9   :  { %v701_v20 = vmul.f32 %v700_v19, %v699_v18 }
0x10cb   :  { %v1515_v21 = vperm.slane %v701_v20, 0 }
0x10cd   :  { %v704_v22 = vsel %vm1430_vm5, %v1515_v21, 0.0 }
0x10ce   :  { %708 = vadd.xlane.f32.xlu2 %v704_v22 }
0x1141   :  { %v709_v23 = vpop.xlane.xlu2 %708 }
0x1142   :  { %v716_v24 = vmul.f32 %v709_v23, %v1515_v21 }
0x1144   :  { %v719_v25 = vsub.f32 %v661_v53, %v716_v24 }
0x1146   :  { %722 = vst [vmem:[#allocation2 + $0x8] sm:$0xff] %v719_v25 }
0x114d   :  { %v730_v26 = vld [vmem:[#allocation2 + $0xb] sm:$0x1] }
0x114e   :  { %v732_v27 = vsel %vm731_vm3, %v730_v26, 0.0  ;;  %v757_v52 = vsel %vm756_vm9, %v730_v26, 0.0 }
0x114f   :  { %v733_v28 = vsel %vm50_vm0, %v732_v27, 0.0 }
0x1150   :  { %734 = vadd.xlane.f32.xlu0 %v733_v28 }
0x11c3   :  { %v735_v29 = vpop.xlane.xlu0 %734 }
0x11c4   :  { %v736_v30 = vrot.slane %v735_v29, 4 }
0x11c6   :  { %v737_v31 = vadd.f32 %v736_v30, %v735_v29 }
0x11c8   :  { %v738_v32 = vrot.slane %v737_v31, 2 }
0x11ca   :  { %v739_v34 = vadd.f32 %v738_v32, %v737_v31 }
0x11cc   :  { %v740_v36 = vrot.slane %v739_v34, 1 }
0x11ce   :  { %v741_v37 = vadd.f32 %v740_v36, %v739_v34 }
0x11d0   :  { %1137 = vpush %v741_v37 }
0x1201   :  { %s1138_s13 = spop %1137 }
0x1202   :  { %s743_s14 = smax.f32 %s1317_s21, %s1138_s13  ;;  %s1056_s13 = sshll.u32 %s1721_s2, 4  ;;  %s1057_s13 = int_to_ptr.hbm [resolvable:$true] %s1056_s13 }
0x1203   :  { %v744_v39 = vstv %s743_s14 }
0x1204   :  { %1224 = vrsqrt.f32 %v744_v39  ;;  %vm751_vm6 = vweird.f32 %v744_v39 }
0x1205   :  { %1226 = vlog2.f32 %v744_v39 }
0x120a   :  { %v1225_v43 = vpop.eup %1224 }
0x120b   :  { %v746_v44 = vmul.f32 %v1225_v43, %v744_v39  ;;  %vm752_vm4 = vweird.f32 %v1225_v43  ;;  %v1227_v47 = vpop.eup %1226 }
0x120c   :  { %vm753_vm8 = vmor %vm751_vm6, %vm752_vm4  ;;  %v784_v51 = vmul.f32 0.6931472, %v1227_v47  ;;  %vm872_vm4 = vcmp.gt.s32.totalorder %v1342_v11, 13  ;;  %vm905_vm6 = vcmp.eq.s32.totalorder %v1342_v11, 14 }
0x120d   :  { %v747_v14 = vmul.f32 %v1225_v43, %v746_v44 }
0x120f   :  { %v748_v45 = vmul.f32 0.5, %v747_v14 }
0x1211   :  { %v749_v46 = vsub.f32 1.5, %v748_v45 }
0x1213   :  { %v750_v48 = vmul.f32 %v1225_v43, %v749_v46 }
0x1215   :  { %v754_v50 = vsel %vm753_vm8, %v1225_v43, %v750_v48 }
0x1216   :  { %1139 = vpush %v754_v50 }
0x1217   :  { %1141 = vpush %v784_v51 }
0x1247   :  { %s1140_s15 = spop %1139 }
0x1248   :  { %v758_v53 = vstv %s1140_s15  ;;  %s1535_s17 = spop %1141 }
0x1249   :  { %v759_v54 = vmul.f32 %v758_v53, %v757_v52 }
0x124b   :  { %v1527_v55 = vperm.slane %v759_v54, 0 }
0x124d   :  { %v762_v56 = vsel %vm1430_vm5, %v1527_v55, 0.0 }
0x124e   :  { %766 = vadd.xlane.f32.xlu1 %v762_v56 }
0x12c1   :  { %v767_v57 = vpop.xlane.xlu1 %766 }
0x12c2   :  { %v774_v58 = vmul.f32 %v767_v57, %v1527_v55 }
0x12c4   :  { %v777_v59 = vsub.f32 %v719_v25, %v774_v58 }
0x12c6   :  { %780 = vst [vmem:[#allocation2 + $0x8] sm:$0xff] %v777_v59 }
0x12cd   :  { %v788_v60 = vld [vmem:[#allocation2 + $0xc] sm:$0x1] }
0x12ce   :  { %v790_v61 = vsel %vm789_vm10, %v788_v60, 0.0  ;;  %v815_v25 = vsel %vm814_vm14, %v788_v60, 0.0 }
0x12cf   :  { %v791_v62 = vsel %vm50_vm0, %v790_v61, 0.0 }
0x12d0   :  { %792 = vadd.xlane.f32.xlu2 %v791_v62 }
0x1343   :  { %v793_v63 = vpop.xlane.xlu2 %792 }
0x1344   :  { %v794_v0 = vrot.slane %v793_v63, 4 }
0x1346   :  { %v795_v3 = vadd.f32 %v794_v0, %v793_v63 }
0x1348   :  { %v796_v4 = vrot.slane %v795_v3, 2 }
0x134a   :  { %v797_v6 = vadd.f32 %v796_v4, %v795_v3 }
0x134c   :  { %v798_v7 = vrot.slane %v797_v6, 1 }
0x134e   :  { %v799_v8 = vadd.f32 %v798_v7, %v797_v6 }
0x1350   :  { %1143 = vpush %v799_v8 }
0x1381   :  { %s1144_s18 = spop %1143 }
0x1382   :  { %s801_s19 = smax.f32 %s1317_s21, %s1144_s18 }
0x1383   :  { %v802_v9 = vstv %s801_s19 }
0x1384   :  { %1228 = vrsqrt.f32 %v802_v9  ;;  %vm809_vm12 = vweird.f32 %v802_v9 }
0x1385   :  { %1230 = vlog2.f32 %v802_v9 }
0x138a   :  { %v1229_v10 = vpop.eup %1228 }
0x138b   :  { %v804_v12 = vmul.f32 %v1229_v10, %v802_v9  ;;  %vm810_vm11 = vweird.f32 %v1229_v10  ;;  %v1231_v20 = vpop.eup %1230 }
0x138c   :  { %vm811_vm13 = vmor %vm809_vm12, %vm810_vm11  ;;  %v842_v24 = vmul.f32 0.6931472, %v1231_v20  ;;  %vm930_vm12 = vcmp.gt.s32.totalorder %v1342_v11, 14 }
0x138d   :  { %v805_v16 = vmul.f32 %v1229_v10, %v804_v12 }
0x138f   :  { %v806_v18 = vmul.f32 0.5, %v805_v16 }
0x1391   :  { %v807_v19 = vsub.f32 1.5, %v806_v18 }
0x1393   :  { %v808_v22 = vmul.f32 %v1229_v10, %v807_v19 }
0x1395   :  { %v812_v23 = vsel %vm811_vm13, %v1229_v10, %v808_v22  ;;  %v45_v10 = vadd.s32 16, %v1352_v38  ;;  %vm963_vm13 = vcmp.eq.s32.totalorder %v1342_v11, 15 }
0x1396   :  { %1145 = vpush %v812_v23 }
0x1397   :  { %1147 = vpush %v842_v24  ;;  %vm1564_vm8 = vcmp.eq.s32.totalorder %v45_v10, %v1342_v11 }
0x1398   :  { %v125_v16 = vsel %vm1564_vm8, %v1360_v41, 0.0  ;;  %v299_v18 = vsel %vm1564_vm8, %v1396_v2, 0.0  ;;  %v473_v19 = vsel %vm1564_vm8, %v1444_v42, 0.0  ;;  %v647_v38 = vsel %vm1564_vm8, %v1503_v49, 0.0 }
0x13c7   :  { %s1146_s0 = spop %1145 }
0x13c8   :  { %v816_v26 = vstv %s1146_s0  ;;  %s1547_s1 = spop %1147 }
0x13c9   :  { %v817_v27 = vmul.f32 %v816_v26, %v815_v25 }
0x13cb   :  { %v1539_v28 = vperm.slane %v817_v27, 0 }
0x13cd   :  { %v820_v29 = vsel %vm1430_vm5, %v1539_v28, 0.0  ;;  %v821_v20 = vsel %vm1564_vm8, %v1539_v28, 0.0 }
0x13ce   :  { %824 = vadd.xlane.f32.xlu0 %v820_v29 }
0x1441   :  { %v825_v30 = vpop.xlane.xlu0 %824 }
0x1442   :  { %v832_v31 = vmul.f32 %v825_v30, %v1539_v28 }
0x1444   :  { %v835_v32 = vsub.f32 %v777_v59, %v832_v31 }
0x1446   :  { %838 = vst [vmem:[#allocation2 + $0x8] sm:$0xff] %v835_v32 }
0x144d   :  { %v846_v34 = vld [vmem:[#allocation2 + $0xd] sm:$0x1] }
0x144e   :  { %v848_v36 = vsel %vm847_vm15, %v846_v34, 0.0  ;;  %v873_v60 = vsel %vm872_vm4, %v846_v34, 0.0 }
0x144f   :  { %v849_v37 = vsel %vm50_vm0, %v848_v36, 0.0 }
0x1450   :  { %850 = vadd.xlane.f32.xlu1 %v849_v37 }
0x14c3   :  { %v851_v39 = vpop.xlane.xlu1 %850 }
0x14c4   :  { %v852_v43 = vrot.slane %v851_v39, 4 }
0x14c6   :  { %v853_v44 = vadd.f32 %v852_v43, %v851_v39 }
0x14c8   :  { %v854_v14 = vrot.slane %v853_v44, 2 }
0x14ca   :  { %v855_v45 = vadd.f32 %v854_v14, %v853_v44 }
0x14cc   :  { %v856_v46 = vrot.slane %v855_v45, 1 }
0x14ce   :  { %v857_v47 = vadd.f32 %v856_v46, %v855_v45 }
0x14d0   :  { %1149 = vpush %v857_v47 }
0x1501   :  { %s1150_s22 = spop %1149 }
0x1502   :  { %s859_s25 = smax.f32 %s1317_s21, %s1150_s22 }
0x1503   :  { %v860_v48 = vstv %s859_s25 }
0x1504   :  { %1232 = vrsqrt.f32 %v860_v48  ;;  %vm867_vm2 = vweird.f32 %v860_v48 }
0x1505   :  { %1234 = vlog2.f32 %v860_v48 }
0x150a   :  { %v1233_v50 = vpop.eup %1232 }
0x150b   :  { %v862_v51 = vmul.f32 %v1233_v50, %v860_v48  ;;  %vm868_vm1 = vweird.f32 %v1233_v50  ;;  %v1235_v56 = vpop.eup %1234 }
0x150c   :  { %vm869_vm3 = vmor %vm867_vm2, %vm868_vm1  ;;  %v900_v59 = vmul.f32 0.6931472, %v1235_v56  ;;  %vm988_vm2 = vcmp.gt.s32.totalorder %v1342_v11, 15 }
0x150d   :  { %v863_v52 = vmul.f32 %v1233_v50, %v862_v51  ;;  %v183_v51 = vsel %vm1564_vm8, %v1372_v5, 0.0 }
0x150f   :  { %v864_v53 = vmul.f32 0.5, %v863_v52  ;;  %v357_v52 = vsel %vm1564_vm8, %v1408_v33, 0.0 }
0x1511   :  { %v865_v54 = vsub.f32 1.5, %v864_v53  ;;  %v531_v53 = vsel %vm1564_vm8, %v1471_v17, 0.0 }
0x1513   :  { %v866_v57 = vmul.f32 %v1233_v50, %v865_v54  ;;  %v705_v54 = vsel %vm1564_vm8, %v1515_v21, 0.0 }
0x1515   :  { %v870_v58 = vsel %vm869_vm3, %v1233_v50, %v866_v57  ;;  %v529_v57 = vsel %vm1356_vm7, %v1471_v17, 0.0  ;;  %vm1022_vm3 = vcmp.eq.s32.totalorder %v1342_v11, 16  ;;  %v1318_v11 = vmov 16.0  }
0x1516   :  { %1151 = vpush %v870_v58  ;;  %v645_v58 = vsel %vm1356_vm7, %v1503_v49, 0.0 }
0x1517   :  { %1153 = vpush %v900_v59  ;;  %v819_v59 = vsel %vm1356_vm7, %v1539_v28, 0.0 }
0x1547   :  { %s1152_s26 = spop %1151 }
0x1548   :  { %v874_v61 = vstv %s1152_s26  ;;  %s1583_s27 = spop %1153 }
0x1549   :  { %v875_v62 = vmul.f32 %v874_v61, %v873_v60 }
0x154b   :  { %v1551_v63 = vperm.slane %v875_v62, 0 }
0x154d   :  { %v878_v0 = vsel %vm1430_vm5, %v1551_v63, 0.0  ;;  %v879_v56 = vsel %vm1564_vm8, %v1551_v63, 0.0 }
0x154e   :  { %882 = vadd.xlane.f32.xlu2 %v878_v0 }
0x15c1   :  { %v883_v3 = vpop.xlane.xlu2 %882 }
0x15c2   :  { %v890_v4 = vmul.f32 %v883_v3, %v1551_v63 }
0x15c4   :  { %v1557_v6 = vsub.f32 %v835_v32, %v890_v4 }
0x15c6   :  { %896 = vst [vmem:[#allocation2 + $0x8] sm:$0xff] %v1557_v6 }
0x15cd   :  { %v904_v7 = vld [vmem:[#allocation2 + $0xe] sm:$0x1] }
0x15ce   :  { %v906_v8 = vsel %vm905_vm6, %v904_v7, 0.0  ;;  %v931_v45 = vsel %vm930_vm12, %v904_v7, 0.0  ;;  %v241_v7 = vsel %vm1564_vm8, %v1384_v35, 0.0 }
0x15cf   :  { %v907_v9 = vsel %vm50_vm0, %v906_v8, 0.0  ;;  %v589_v8 = vsel %vm1564_vm8, %v1491_v15, 0.0 }
0x15d0   :  { %908 = vadd.xlane.f32.xlu0 %v907_v9  ;;  %v763_v9 = vsel %vm1564_vm8, %v1527_v55, 0.0 }
0x15d8   :  { %130 = vadd.xlane.f32.xlu0 %v125_v16 }
0x15e0   :  { %304 = vadd.xlane.f32.xlu0 %v299_v18 }
0x15e8   :  { %478 = vadd.xlane.f32.xlu0 %v473_v19 }
0x15f0   :  { %652 = vadd.xlane.f32.xlu0 %v647_v38 }
0x15f8   :  { %826 = vadd.xlane.f32.xlu0 %v821_v20 }
0x1643   :  { %v909_v22 = vpop.xlane.xlu0 %908 }
0x1644   :  { %v910_v23 = vrot.slane %v909_v22, 4 }
0x1646   :  { %v911_v24 = vadd.f32 %v910_v23, %v909_v22 }
0x1648   :  { %v912_v25 = vrot.slane %v911_v24, 2 }
0x164a   :  { %v913_v26 = vadd.f32 %v912_v25, %v911_v24 }
0x164c   :  { %v914_v27 = vrot.slane %v913_v26, 1 }
0x164e   :  { %v915_v29 = vadd.f32 %v914_v27, %v913_v26 }
0x1650   :  { %1155 = vpush %v915_v29 }
0x1681   :  { %s1156_s30 = spop %1155 }
0x1682   :  { %s917_s3 = smax.f32 %s1317_s21, %s1156_s30 }
0x1683   :  { %v918_v30 = vstv %s917_s3 }
0x1684   :  { %1236 = vrsqrt.f32 %v918_v30  ;;  %vm925_vm10 = vweird.f32 %v918_v30 }
0x1685   :  { %1238 = vlog2.f32 %v918_v30 }
0x168a   :  { %v1237_v31 = vpop.eup %1236 }
0x168b   :  { %v920_v32 = vmul.f32 %v1237_v31, %v918_v30  ;;  %vm926_vm9 = vweird.f32 %v1237_v31  ;;  %v1239_v39 = vpop.eup %1238 }
0x168c   :  { %vm927_vm11 = vmor %vm925_vm10, %vm926_vm9  ;;  %v958_v14 = vmul.f32 0.6931472, %v1239_v39  ;;  %v148_v39 = vstv %s1368_s24 }
0x168d   :  { %v921_v34 = vmul.f32 %v1237_v31, %v920_v32 }
0x168f   :  { %v922_v36 = vmul.f32 0.5, %v921_v34 }
0x1691   :  { %v923_v37 = vsub.f32 1.5, %v922_v36 }
0x1693   :  { %v924_v43 = vmul.f32 %v1237_v31, %v923_v37  ;;  %v206_v37 = vstv %s1380_s28 }
0x1695   :  { %v928_v44 = vsel %vm927_vm11, %v1237_v31, %v924_v43  ;;  %v264_v43 = vstv %s1392_s4 }
0x1696   :  { %1157 = vpush %v928_v44  ;;  %v207_v44 = vadd.f32 %v206_v37, %v148_v39 }
0x1697   :  { %1159 = vpush %v958_v14  ;;  %v322_v14 = vstv %s1404_s8 }
0x16c7   :  { %s1158_s5 = spop %1157 }
0x16c8   :  { %v932_v46 = vstv %s1158_s5  ;;  %s1641_s7 = spop %1159 }
0x16c9   :  { %v933_v47 = vmul.f32 %v932_v46, %v931_v45  ;;  %v265_v45 = vadd.f32 %v264_v43, %v207_v44  ;;  %v380_v46 = vstv %s1416_s12 }
0x16cb   :  { %v1587_v48 = vperm.slane %v933_v47, 0  ;;  %v323_v47 = vadd.f32 %v322_v14, %v265_v45 }
0x16cd   :  { %v936_v50 = vsel %vm1430_vm5, %v1587_v48, 0.0  ;;  %v937_v10 = vsel %vm1564_vm8, %v1587_v48, 0.0  ;;  %v935_v12 = vsel %vm1356_vm7, %v1587_v48, 0.0 }
0x16ce   :  { %940 = vadd.xlane.f32.xlu1 %v936_v50  ;;  %v438_v50 = vstv %s1440_s16 }
0x16d6   :  { %188 = vadd.xlane.f32.xlu1 %v183_v51  ;;  %v381_v51 = vadd.f32 %v380_v46, %v323_v47 }
0x16de   :  { %362 = vadd.xlane.f32.xlu1 %v357_v52  ;;  %v496_v52 = vstv %s1467_s20 }
0x16e6   :  { %536 = vadd.xlane.f32.xlu1 %v531_v53  ;;  %v439_v53 = vadd.f32 %v438_v50, %v381_v51 }
0x16ee   :  { %710 = vadd.xlane.f32.xlu1 %v705_v54  ;;  %v554_v54 = vstv %s1487_s23 }
0x16f6   :  { %884 = vadd.xlane.f32.xlu1 %v879_v56  ;;  %v497_v56 = vadd.f32 %v496_v52, %v439_v53 }
0x16fe   :  { %532 = vadd.xlane.f32.xlu1 %v529_v57  ;;  %v612_v57 = vstv %s1499_s29 }
0x1706   :  { %648 = vadd.xlane.f32.xlu1 %v645_v58  ;;  %v555_v58 = vadd.f32 %v554_v54, %v497_v56 }
0x170e   :  { %822 = vadd.xlane.f32.xlu1 %v819_v59  ;;  %v670_v59 = vstv %s1511_s6 }
0x1741   :  { %v941_v60 = vpop.xlane.xlu1 %940 }
0x1742   :  { %v948_v61 = vmul.f32 %v941_v60, %v1587_v48  ;;  %v613_v60 = vadd.f32 %v612_v57, %v555_v58 }
0x1744   :  { %v1618_v62 = vsub.f32 %v1557_v6, %v948_v61  ;;  %v415_v6 = vsel %vm1564_vm8, %v1420_v1, 0.0  ;;  %v728_v61 = vstv %s1523_s11 }
0x1746   :  { %954 = vst [vmem:[#allocation2 + $0x8] sm:$0xff] %v1618_v62 }
0x174d   :  { %v1622_v0 = vld [vmem:[#allocation2 + $0xf] sm:$0x1] }
0x174e   :  { %v964_v3 = vsel %vm963_vm13, %v1622_v0, 0.0 }
0x174f   :  { %v965_v4 = vsel %vm50_vm0, %v964_v3, 0.0  ;;  %v671_v3 = vadd.f32 %v670_v59, %v613_v60 }
0x1750   :  { %966 = vadd.xlane.f32.xlu2 %v965_v4  ;;  %v786_v4 = vstv %s1535_s17  ;;  %s1319_s17 = smov [#allocation8]  }
0x1758   :  { %246 = vadd.xlane.f32.xlu2 %v241_v7  ;;  %v729_v7 = vadd.f32 %v728_v61, %v671_v3 }
0x1760   :  { %420 = vadd.xlane.f32.xlu2 %v415_v6  ;;  %v844_v6 = vstv %s1547_s1 }
0x1768   :  { %594 = vadd.xlane.f32.xlu2 %v589_v8  ;;  %v787_v8 = vadd.f32 %v786_v4, %v729_v7 }
0x1770   :  { %768 = vadd.xlane.f32.xlu2 %v763_v9  ;;  %v902_v9 = vstv %s1583_s27 }
0x1778   :  { %942 = vadd.xlane.f32.xlu2 %v937_v10  ;;  %v845_v10 = vadd.f32 %v844_v6, %v787_v8 }
0x17c3   :  { %v967_v16 = vpop.xlane.xlu2 %966 }
0x17c4   :  { %v968_v18 = vrot.slane %v967_v16, 4 }
0x17c6   :  { %v969_v19 = vadd.f32 %v968_v18, %v967_v16  ;;  %v960_v16 = vstv %s1641_s7  ;;  %v903_v18 = vadd.f32 %v902_v9, %v845_v10 }
0x17c8   :  { %v970_v38 = vrot.slane %v969_v19, 2 }
0x17ca   :  { %v971_v20 = vadd.f32 %v970_v38, %v969_v19  ;;  %v961_v19 = vadd.f32 %v960_v16, %v903_v18  ;;  %v989_v38 = vsel %vm988_vm2, %v1622_v0, 0.0  ;;  %v587_v0 = vsel %vm1356_vm7, %v1491_v15, 0.0 }
0x17cc   :  { %v972_v22 = vrot.slane %v971_v20, 1 }
0x17ce   :  { %v973_v23 = vadd.f32 %v972_v22, %v971_v20 }
0x17d0   :  { %1161 = vpush %v973_v23 }
0x1801   :  { %s1162_s9 = spop %1161 }
0x1802   :  { %s975_s10 = smax.f32 %s1317_s21, %s1162_s9 }
0x1803   :  { %v976_v24 = vstv %s975_s10 }
0x1804   :  { %1240 = vrsqrt.f32 %v976_v24  ;;  %vm983_vm15 = vweird.f32 %v976_v24 }
0x1805   :  { %1242 = vlog2.f32 %v976_v24 }
0x1806   :  { %1244 = vrcp.f32 %v1318_v11 }
0x180a   :  { %v1241_v25 = vpop.eup %1240 }
0x180b   :  { %v978_v26 = vmul.f32 %v1241_v25, %v976_v24  ;;  %vm984_vm14 = vweird.f32 %v1241_v25  ;;  %v1243_v31 = vpop.eup %1242 }
0x180c   :  { %vm985_vm1 = vmor %vm983_vm15, %vm984_vm14  ;;  %v1016_v36 = vmul.f32 0.6931472, %v1243_v31  ;;  %v189_v31 = vpop.xlane.xlu1 %188 }
0x180d   :  { %v979_v27 = vmul.f32 %v1241_v25, %v978_v26  ;;  %v195_v37 = vmul.f32 %v189_v31, %v1372_v5  ;;  %v703_v31 = vsel %vm1356_vm7, %v1515_v21, 0.0 }
0x180f   :  { %v980_v29 = vmul.f32 0.5, %v979_v27 }
0x1811   :  { %v981_v30 = vsub.f32 1.5, %v980_v29  ;;  %v761_v29 = vsel %vm1356_vm7, %v1527_v55, 0.0 }
0x1813   :  { %v982_v32 = vmul.f32 %v1241_v25, %v981_v30  ;;  %v131_v30 = vpop.xlane.xlu0 %130 }
0x1814   :  { %v363_v47 = vpop.xlane.xlu1 %362 }
0x1815   :  { %v986_v34 = vsel %vm985_vm1, %v1241_v25, %v982_v32  ;;  %v137_v32 = vmul.f32 %v131_v30, %v1360_v41  ;;  %v369_v52 = vmul.f32 %v363_v47, %v1408_v33 }
0x1816   :  { %1163 = vpush %v986_v34  ;;  %v78_v34 = vld [vmem:[#allocation3 + $0x10] sm:$0xff] }
0x1817   :  { %1165 = vpush %v1016_v36  ;;  %v247_v36 = vpop.xlane.xlu2 %246  ;;  %v140_v39 = vsub.f32 %v78_v34, %v137_v32  ;;  %v877_v32 = vsel %vm1356_vm7, %v1551_v63, 0.0 }
0x1818   :  { %v253_v43 = vmul.f32 %v247_v36, %v1384_v35 }
0x1819   :  { %v198_v44 = vsub.f32 %v140_v39, %v195_v37  ;;  %v1245_v37 = vpop.eup %1244 }
0x181a   :  { %v1040_v39 = vmul.f32 16.0, %v1245_v37 }
0x181b   :  { %v305_v14 = vpop.xlane.xlu0 %304  ;;  %v256_v45 = vsub.f32 %v198_v44, %v253_v43 }
0x181c   :  { %v311_v46 = vmul.f32 %v305_v14, %v1396_v2  ;;  %v537_v57 = vpop.xlane.xlu1 %536  ;;  %v1041_v14 = vsub.f32 1.0, %v1040_v39 }
0x181d   :  { %v543_v59 = vmul.f32 %v537_v57, %v1471_v17 }
0x181e   :  { %v314_v51 = vsub.f32 %v256_v45, %v311_v46  ;;  %v1042_v13 = vmul.f32 %v1245_v37, %v1041_v14 }
0x181f   :  { %v421_v50 = vpop.xlane.xlu2 %420 }
0x1820   :  { %v427_v53 = vmul.f32 %v421_v50, %v1420_v1  ;;  %v372_v41 = vsub.f32 %v314_v51, %v369_v52  ;;  %v1246_v50 = vld [vmem:[#allocation2] sm:$0xff]  ;;  %v1043_v57 = vadd.f32 %v1245_v37, %v1042_v13 }
0x1822   :  { %v430_v56 = vsub.f32 %v372_v41, %v427_v53 }
0x1823   :  { %v479_v54 = vpop.xlane.xlu0 %478 }
0x1824   :  { %v485_v5 = vmul.f32 %v479_v54, %v1444_v42  ;;  %v711_v33 = vpop.xlane.xlu1 %710 }
0x1825   :  { %v717_v6 = vmul.f32 %v711_v33, %v1515_v21 }
0x1826   :  { %v488_v35 = vsub.f32 %v430_v56, %v485_v5 }
0x1827   :  { %v595_v58 = vpop.xlane.xlu2 %594 }
0x1828   :  { %v601_v60 = vmul.f32 %v595_v58, %v1491_v15  ;;  %v546_v2 = vsub.f32 %v488_v35, %v543_v59 }
0x182a   :  { %v604_v3 = vsub.f32 %v546_v2, %v601_v60 }
0x182b   :  { %v653_v61 = vpop.xlane.xlu0 %652 }
0x182c   :  { %v659_v4 = vmul.f32 %v653_v61, %v1503_v49  ;;  %v885_v18 = vpop.xlane.xlu1 %884 }
0x182e   :  { %v662_v1 = vsub.f32 %v604_v3, %v659_v4 }
0x182f   :  { %v769_v7 = vpop.xlane.xlu2 %768 }
0x1830   :  { %v775_v8 = vmul.f32 %v769_v7, %v1527_v55  ;;  %v720_v42 = vsub.f32 %v662_v1, %v717_v6 }
0x1832   :  { %v778_v10 = vsub.f32 %v720_v42, %v775_v8 }
0x1833   :  { %v827_v9 = vpop.xlane.xlu0 %826 }
0x1834   :  { %v833_v16 = vmul.f32 %v827_v9, %v1539_v28  ;;  %v533_v36 = vpop.xlane.xlu1 %532 }
0x1835   :  { %v541_v44 = vmul.f32 %v533_v36, %v1471_v17 }
0x1837   :  { %v544_v51 = vsub.f32 %v1246_v50, %v541_v44 }
0x183c   :  { %v649_v45 = vpop.xlane.xlu1 %648 }
0x183d   :  { %v657_v56 = vmul.f32 %v649_v45, %v1503_v49 }
0x1844   :  { %v823_v60 = vpop.xlane.xlu1 %822 }
0x1845   :  { %v831_v33 = vmul.f32 %v823_v60, %v1539_v28 }
0x1847   :  { %s1164_s21 = spop %1163 }
0x1848   :  { %v990_v20 = vstv %s1164_s21  ;;  %s1166_s24 = spop %1165 }
0x1849   :  { %v991_v22 = vmul.f32 %v990_v20, %v989_v38  ;;  %v1018_v23 = vstv %s1166_s24  ;;  %v836_v38 = vsub.f32 %v778_v10, %v833_v16  ;;  %v891_v20 = vmul.f32 %v885_v18, %v1551_v63 }
0x184a   :  { %v1019_v24 = vadd.f32 %v1018_v23, %v961_v19  ;;  %v943_v19 = vpop.xlane.xlu2 %942 }
0x184b   :  { %v1661_v25 = vperm.slane %v991_v22, 0  ;;  %v949_v22 = vmul.f32 %v943_v19, %v1587_v48  ;;  %v894_v23 = vsub.f32 %v836_v38, %v891_v20 }
0x184c   :  { %1167 = vpush %v1019_v24 }
0x184d   :  { %v995_v26 = vsel %vm1564_vm8, %v1661_v25, 0.0  ;;  %v993_v27 = vsel %vm1356_vm7, %v1661_v25, 0.0  ;;  %v994_v34 = vsel %vm1430_vm5, %v1661_v25, 0.0 }
0x184e   :  { %1000 = vadd.xlane.f32.xlu0 %v995_v26  ;;  %996 = vadd.xlane.f32.xlu1 %v993_v27  ;;  %v952_v26 = vsub.f32 %v894_v23, %v949_v22 }
0x1856   :  { %590 = vadd.xlane.f32.xlu0 %v587_v0 }
0x185e   :  { %764 = vadd.xlane.f32.xlu0 %v761_v29 }
0x1866   :  { %938 = vadd.xlane.f32.xlu0 %v935_v12 }
0x187d   :  { %s1168_s28 = spop %1167 }
0x187e   :  { %s1036_s12 = smul.f32 0.5, %s1168_s28 }
0x18c1   :  { %v1001_v24 = vpop.xlane.xlu0 %1000  ;;  %v997_v8 = vpop.xlane.xlu1 %996 }
0x18c2   :  { %v1007_v27 = vmul.f32 %v1001_v24, %v1661_v25  ;;  %v1005_v9 = vmul.f32 %v997_v8, %v1661_v25 }
0x18c4   :  { %v1010_v0 = vsub.f32 %v952_v26, %v1007_v27 }
0x18c6   :  { %1013 = vst [vmem:[#allocation2 + $0x10] sm:$0xff] %v1010_v0 }
0x18c9   :  { %v591_v43 = vpop.xlane.xlu0 %590 }
0x18ca   :  { %v599_v40 = vmul.f32 %v591_v43, %v1491_v15 }
0x18cc   :  { %v602_v53 = vsub.f32 %v544_v51, %v599_v40 }
0x18cd   :  { %v1021_v29 = vld [vmem:[#allocation2 + $0x10] sm:$0x1] }
0x18ce   :  { %v1023_v12 = vsel %vm1022_vm3, %v1021_v29, 0.0  ;;  %v660_v17 = vsub.f32 %v602_v53, %v657_v56 }
0x18cf   :  { %v1024_v30 = vsel %vm50_vm0, %v1023_v12, 0.0  ;;  %vm1044_vm0 = vweird.f32 %v1245_v37 }
0x18d0   :  { %1025 = vadd.xlane.f32.xlu2 %v1024_v30  ;;  %v1045_v3 = vsel %vm1044_vm0, %v1245_v37, %v1043_v57 }
0x18d1   :  { %v765_v54 = vpop.xlane.xlu0 %764 }
0x18d2   :  { %v773_v15 = vmul.f32 %v765_v54, %v1527_v55 }
0x18d8   :  { %706 = vadd.xlane.f32.xlu2 %v703_v31 }
0x18d9   :  { %v939_v49 = vpop.xlane.xlu0 %938 }
0x18e0   :  { %880 = vadd.xlane.f32.xlu2 %v877_v32 }
0x18e8   :  { %998 = vadd.xlane.f32.xlu2 %v994_v34 }
0x1943   :  { %v1026_v46 = vpop.xlane.xlu2 %1025 }
0x1944   :  { %v1027_v47 = vrot.slane %v1026_v46, 4 }
0x1946   :  { %v1028_v52 = vadd.f32 %v1027_v47, %v1026_v46 }
0x1948   :  { %v1029_v41 = vrot.slane %v1028_v52, 2 }
0x194a   :  { %v1030_v5 = vadd.f32 %v1029_v41, %v1028_v52 }
0x194b   :  { %v707_v58 = vpop.xlane.xlu2 %706 }
0x194c   :  { %v715_v35 = vmul.f32 %v707_v58, %v1515_v21  ;;  %v1031_v59 = vrot.slane %v1030_v5, 1  ;;  %v947_v21 = vmul.f32 %v939_v49, %v1587_v48 }
0x194e   :  { %v718_v2 = vsub.f32 %v660_v17, %v715_v35  ;;  %v1032_v61 = vadd.f32 %v1031_v59, %v1030_v5 }
0x1950   :  { %v776_v4 = vsub.f32 %v718_v2, %v773_v15  ;;  %1169 = vpush %v1032_v61 }
0x1951   :  { %1171 = vpush %v1045_v3 }
0x1952   :  { %v834_v1 = vsub.f32 %v776_v4, %v831_v33 }
0x1953   :  { %v881_v7 = vpop.xlane.xlu2 %880 }
0x1954   :  { %v889_v6 = vmul.f32 %v881_v7, %v1551_v63 }
0x1956   :  { %v892_v42 = vsub.f32 %v834_v1, %v889_v6 }
0x1958   :  { %v950_v55 = vsub.f32 %v892_v42, %v947_v21 }
0x195a   :  { %v1008_v10 = vsub.f32 %v950_v55, %v1005_v9 }
0x195b   :  { %v999_v16 = vpop.xlane.xlu2 %998 }
0x195c   :  { %1011 = vst [vmem:[#allocation2] sm:$0xff] %v1008_v10  ;;  %v1006_v18 = vmul.f32 %v999_v16, %v1661_v25 }
0x195e   :  { %v1009_v19 = vsub.f32 %v1618_v62, %v1006_v18 }
0x1960   :  { %1012 = vst [vmem:[#allocation2 + $0x8] sm:$0xff] %v1009_v19 }
0x1981   :  { %s1170_s4 = spop %1169 }
0x1982   :  { %s1034_s8 = ssub.f32 0.0, %s1170_s4  ;;  %s1172_s23 = spop %1171 }
0x1984   :  { %s1035_s16 = smul.f32 -0.5, %s1034_s8 }
0x1986   :  { %s1037_s20 = ssub.f32 %s1035_s16, %s1036_s12 }
0x1988   :  { %s1068_s29 = sadd.f32 -14.703016, %s1037_s20 }
0x198a   :  { %s1047_s14 = smul.f32 %s1172_s23, %s1068_s29 }
0x198c   :  { %s1048_s15 = ssub.f32 0.0, %s1047_s14 }
0x198e   :  { %1050 = sst [smem:[#allocation8]] %s1048_s15 }
0x198f   :  { %1059 = dma.smem_to_hbm %s1319_s17, 16, %s1057_s13, [#allocation5]  }
0x1990   :  { %1311 = dma.done.wait [#allocation5], 16  }
0x1991   :  { %1312 = vsyncadd [#allocation5], 4294967280 }
0x1992   :  { %1064 = sfence }
0x1993   :  { %1065 = vsyncpa [#allocation4], 1 }
0x1994   :  { %1066 = vsyncpa [#allocation7], 1 }
0x1995   :  { %1067 = vsyncpa [#allocation5], 1 }

</bundles_post_ra>
